<compile_context>
chip_gen: v7x
topology: tpu7x:2x2x1
jax: 0.10.0
libtpu: 0.0.40
codegen_flags: <defaults>
</compile_context>

<pallas_src>
import numpy as np

import jax
import jax.numpy as jnp
from jax import lax
from jax.experimental import pallas as pl
from jax.experimental.pallas import tpu as pltpu

# ---- static configuration, matching
#      Inception(fc_in_channels=32, in_channels=16,
#                ch1x1=4, ch3x3red=8, ch3x3=8, ch5x5red=8, ch5x5=4) ----
B = 2
H = W = 16
P = H * W + 1            # 257 tokens (CLS + 16x16 patches); fixed by the reshape in forward
FC_IN = 32               # fc_in_channels
D = 16                   # in_channels; must equal ch1x1 + ch3x3 + ch5x5
CH1, R3, C3, R5, C5 = 4, 8, 8, 8, 4
BN_EPS = 1e-3
assert CH1 + C3 + C5 == D

PAD = 8                      # zero-halo rows above/below the stacked rows (8-aligned stores)
RLANES = W * (R3 + R5)       # 256 lanes holding [r3 | r5] reduced activations


# ---------------- the fused Pallas kernel ----------------

def _inception_fused_kernel(
    x_rows_ref,    # (B*H, W*FC_IN)          f32   patch tokens, row layout
    fc1_big_ref,   # (W*FC_IN, W*D)          bf16  kron(I_W, fc1_w), cols branch-major
    fc1b_ref,      # (1, W*D)                f32
    w1x1_ref,      # (W*D, W*(R3+R5+CH1))    bf16  fused 1x1 convs, cols [r3 | r5 | b1]
    b1x1_ref,      # (1, W*(R3+R5+CH1))      f32
    wb3_ref,       # (3*W*R3, W*C3)          bf16  banded 3x3 conv weights
    b3_ref,        # (1, W*C3)               f32
    wb5_ref,       # (5*W*R5, W*C5)          bf16  banded 5x5 conv weights
    b5_ref,        # (1, W*C5)               f32
    fc2_big_ref,   # (W*D, W*FC_IN)          bf16  kron(I_W, fc2_w), rows branch-major
    fc2b_ref,      # (1, W*FC_IN)            f32
    out_ref,       # (B*H, W*FC_IN)          f32
    halo_ref,      # (B*H + 2*PAD, RLANES)   f32 scratch (zero-halo staging buffer)
):
    f32, bf16 = jnp.float32, jnp.bfloat16
    bh = x_rows_ref.shape[0]

    def mm(a_bf, w_ref):  # bf16 MXU matmul, f32 accumulation
        return jnp.dot(a_bf, w_ref[...], preferred_element_type=f32)

    # ---- D_fc1 + relu (output lanes already in branch-major order) ----
    x0 = jnp.maximum(mm(x_rows_ref[...].astype(bf16), fc1_big_ref) + fc1b_ref[...], 0.0)
    x0b = x0.astype(bf16)                                            # cast once, reused

    # ---- all three 1x1 convs (BN folded) fused into ONE matmul ----
    y = jnp.maximum(mm(x0b, w1x1_ref) + b1x1_ref[...], 0.0)         # (bh, 320)
    rr = y[:, :RLANES]                                               # [r3 | r5], (bh, 256)

    # ---- stage rr in a zero-halo scratch: ky row-shifts become static-offset loads ----
    zero_halo = jnp.zeros((PAD, RLANES), f32)
    halo_ref[0:PAD, :] = zero_halo
    halo_ref[PAD + bh:PAD + bh + PAD, :] = zero_halo
    halo_ref[PAD:PAD + bh, :] = rr

    # row index within each stacked image (H is a power of two)
    row = lax.broadcasted_iota(jnp.int32, (bh, 1), 0) & (H - 1)

    def shifted(d, lo):
        """rows moved by d within each image; out-of-image rows -> 0 (per-image mask)."""
        v = halo_ref[PAD + d:PAD + d + bh, lo:RLANES]
        ok = jnp.logical_and(row + d >= 0, row + d < H)
        return jnp.where(ok, v, 0.0)

    c3l = W * R3
    sm1 = shifted(-1, 0)            # used by both the 3x3 and 5x5 branches
    sp1 = shifted(1, 0)
    sm2 = shifted(-2, c3l)          # only the r5 lanes are needed for |d| = 2
    sp2 = shifted(2, c3l)

    # ---- 3x3 conv: one wide banded matmul over the ky-shifted copies ----
    z3 = jnp.concatenate([sm1[:, :c3l], rr[:, :c3l], sp1[:, :c3l]], axis=-1)   # (bh, 384)
    b2 = jnp.maximum(mm(z3.astype(bf16), wb3_ref) + b3_ref[...], 0.0)          # (bh, 128)

    # ---- 5x5 conv, same scheme ----
    z5 = jnp.concatenate(
        [sm2, sm1[:, c3l:], rr[:, c3l:], sp1[:, c3l:], sp2], axis=-1)          # (bh, 640)
    b3_ = jnp.maximum(mm(z5.astype(bf16), wb5_ref) + b5_ref[...], 0.0)         # (bh, 64)

    # ---- branch concat (branch-major: [b2 | b3 | b1]) + residual + D_fc2 ----
    seq = x0 + jnp.concatenate([b2, b3_, y[:, RLANES:]], axis=-1)              # (bh, 256)
    out_ref[...] = (mm(seq.astype(bf16), fc2_big_ref) + fc2b_ref[...]).astype(out_ref.dtype)


_WEIGHT_ORDER = (
    'fc1_big', 'fc1b_rows', 'w1x1', 'b1x1_rows', 'wb3', 'b3_rows',
    'wb5', 'b5_rows', 'fc2_big', 'fc2b_rows',
)


def inception_pallas(x, fp):
    b = x.shape[0]
    bh = b * H
    x_rows = x[:, 1:, :].reshape(bh, W * FC_IN)          # batch stacked into the M dimension
    weights = [fp[n] for n in _WEIGHT_ORDER]

    def const_spec(a):
        return pl.BlockSpec(a.shape, lambda i, _n=a.ndim: (0,) * _n)

    out_rows = pl.pallas_call(
        _inception_fused_kernel,
        out_shape=jax.ShapeDtypeStruct((bh, W * FC_IN), jnp.float32),
        grid=(1,),
        in_specs=[pl.BlockSpec((bh, W * FC_IN), lambda i: (0, 0))]
                 + [const_spec(a) for a in weights],
        out_specs=pl.BlockSpec((bh, W * FC_IN), lambda i: (0, 0)),
        scratch_shapes=[pltpu.VMEM((bh + 2 * PAD, RLANES), jnp.float32)],
        compiler_params=pltpu.CompilerParams(dimension_semantics=("arbitrary",)),
    )(x_rows, *weights)

    out_patches = out_rows.reshape(b, H * W, FC_IN)

    # CLS token: fc1 -> relu -> (double-count residual) -> fc2; two tiny dense ops,
    # done in plain JAX (XLA fuses them) instead of dragging narrow refs into the kernel.
    x0_cls = jax.nn.relu(x[:, 0, :] @ fp['fc1_w'] + fp['fc1_b'])
    out_cls = (x0_cls + x0_cls) @ fp['fc2_w'] + fp['fc2_b']

    return jnp.concatenate([out_cls[:, None, :], out_patches], axis=1)


# ---------------- host-side weight preparation (BN folding, kron / banded, perms) ----------------

def _fold_bn_np(cp):
    scale = np.asarray(cp['gamma'], np.float32) / np.sqrt(np.asarray(cp['var'], np.float32) + BN_EPS)
    bias = (np.asarray(cp['b'], np.float32) * scale
            + np.asarray(cp['beta'], np.float32)
            - np.asarray(cp['mean'], np.float32) * scale)
    return scale, bias


def _band_matrix(w_folded):
    """(K,K,Cin,Cout) HWIO conv weights (BN folded) -> (K*W*Cin, W*Cout) banded matrix."""
    K, _, ci, co = w_folded.shape
    pad = K // 2
    out = np.zeros((K * W * ci, W * co), np.float32)
    for ky in range(K):
        for wo in range(W):
            for kx in range(K):
                wi = wo + kx - pad
                if 0 <= wi < W:
                    out[ky * W * ci + wi * ci: ky * W * ci + (wi + 1) * ci,
                        wo * co:(wo + 1) * co] = w_folded[ky, kx]
    return out


def prepare_weights(p):
    eye_w = np.eye(W, dtype=np.float32)
    kron = lambda a: np.kron(eye_w, np.asarray(a, np.float32))
    tile = lambda a: np.tile(np.asarray(a, np.float32), W)
    bf = lambda a: jnp.asarray(a, jnp.bfloat16)
    f32 = lambda a: jnp.asarray(a, jnp.float32)

    fc1_w = np.asarray(p['fc1_w'], np.float32)     # (FC_IN, D)
    fc1_b = np.asarray(p['fc1_b'], np.float32)
    fc2_w = np.asarray(p['fc2_w'], np.float32)     # (D, FC_IN)
    fc2_b = np.asarray(p['fc2_b'], np.float32)

    s1, bias1 = _fold_bn_np(p['b1'])
    s3r, bias3r = _fold_bn_np(p['b2a'])
    s5r, bias5r = _fold_bn_np(p['b3a'])
    s3c, bias3c = _fold_bn_np(p['b2b'])
    s5c, bias5c = _fold_bn_np(p['b3b'])

    w1 = np.asarray(p['b1']['w'], np.float32)[0, 0] * s1        # (D, CH1)
    wr3 = np.asarray(p['b2a']['w'], np.float32)[0, 0] * s3r     # (D, R3)
    wr5 = np.asarray(p['b3a']['w'], np.float32)[0, 0] * s5r     # (D, R5)
    w3 = np.asarray(p['b2b']['w'], np.float32) * s3c            # (3,3,R3,C3)
    w5 = np.asarray(p['b3b']['w'], np.float32) * s5c            # (5,5,R5,C5)

    # Branch-major lane permutation of the D-channel space:
    # new lanes = [branch2 ch 4..11 | branch3 ch 12..15 | branch1 ch 0..3], w-major per block.
    # With x0 in this order, the in-kernel concat [b2 | b3 | b1] aligns with x0 directly,
    # so the residual is a plain add and D_fc2 is a single matmul (no duplicated fc2 weights).
    perm = []
    for off, cnt in ((CH1, C3), (CH1 + C3, C5), (0, CH1)):
        for w in range(W):
            for c in range(cnt):
                perm.append(w * D + off + c)
    perm = np.asarray(perm, np.int64)

    w1x1 = np.concatenate([kron(wr3), kron(wr5), kron(w1)], axis=1)[perm, :]   # (256, 320)
    b1x1 = np.concatenate([tile(bias3r), tile(bias5r), tile(bias1)])           # (320,)

    return {
        'fc1_big': bf(kron(fc1_w)[:, perm]),           # (512, 256)
        'fc1b_rows': f32(tile(fc1_b)[perm][None, :]),  # (1, 256)
        'w1x1': bf(w1x1),                              # (256, 320)
        'b1x1_rows': f32(b1x1[None, :]),               # (1, 320)
        'wb3': bf(_band_matrix(w3)),                   # (384, 128)
        'b3_rows': f32(tile(bias3c)[None, :]),         # (1, 128)
        'wb5': bf(_band_matrix(w5)),                   # (640, 64)
        'b5_rows': f32(tile(bias5c)[None, :]),         # (1, 64)
        'fc2_big': bf(kron(fc2_w)[perm, :]),           # (256, 512)
        'fc2b_rows': f32(tile(fc2_b)[None, :]),        # (1, 512)
        # CLS path (plain JAX in the wrapper)
        'fc1_w': f32(fc1_w), 'fc1_b': f32(fc1_b),
        'fc2_w': f32(fc2_w), 'fc2_b': f32(fc2_b),
    }


# ---------------- deterministic parameter init ----------------

def init_params(key):
    def conv_p(k, ksize, cin, cout):
        kw, kb, kg, kbe, km, kv = jax.random.split(k, 6)
        return dict(
            w=0.1 * jax.random.normal(kw, (ksize, ksize, cin, cout), jnp.float32),  # HWIO
            b=0.05 * jax.random.normal(kb, (cout,), jnp.float32),
            gamma=1.0 + 0.1 * jax.random.normal(kg, (cout,), jnp.float32),
            beta=0.05 * jax.random.normal(kbe, (cout,), jnp.float32),
            mean=0.05 * jax.random.normal(km, (cout,), jnp.float32),
            var=1.0 + 0.1 * jnp.abs(jax.random.normal(kv, (cout,), jnp.float32)),
        )
    ks = jax.random.split(key, 9)
    return dict(
        fc1_w=0.1 * jax.random.normal(ks[0], (FC_IN, D), jnp.float32),   # (in, out)
        fc1_b=0.05 * jax.random.normal(ks[1], (D,), jnp.float32),
        fc2_w=0.1 * jax.random.normal(ks[2], (D, FC_IN), jnp.float32),
        fc2_b=0.05 * jax.random.normal(ks[3], (FC_IN,), jnp.float32),
        b1=conv_p(ks[4], 1, D, CH1),
        b2a=conv_p(ks[5], 1, D, R3),
        b2b=conv_p(ks[6], 3, R3, C3),
        b3a=conv_p(ks[7], 1, D, R5),
        b3b=conv_p(ks[8], 5, R5, C5),
    )


# ---------------- pure-JAX reference (eval-mode BN) ----------------

def inception_reference(x, p):
    def basic(z, cp, ksize):
        pad = ksize // 2
        y = lax.conv_general_dilated(
            z, cp['w'], (1, 1), [(pad, pad), (pad, pad)],
            dimension_numbers=('NHWC', 'HWIO', 'NHWC')) + cp['b']
        y = (y - cp['mean']) / jnp.sqrt(cp['var'] + BN_EPS) * cp['gamma'] + cp['beta']
        return jax.nn.relu(y)

    x0 = jax.nn.relu(jnp.einsum('bpf,fd->bpd', x, p['fc1_w']) + p['fc1_b'])
    nb = x0.shape[0]
    xs = x0[:, 1:, :].reshape(nb, H, W, D)
    b1 = basic(xs, p['b1'], 1)
    b2 = basic(basic(xs, p['b2a'], 1), p['b2b'], 3)
    b3 = basic(basic(xs, p['b3a'], 1), p['b3b'], 5)
    conv = jnp.concatenate([b1, b2, b3], axis=-1).reshape(nb, H * W, D)
    seq = jnp.concatenate([x0[:, :1, :], conv], axis=1) + x0
    return jnp.einsum('bpd,df->bpf', seq, p['fc2_w']) + p['fc2_b']


if __name__ == "__main__":
    key = jax.random.PRNGKey(0)
    kp, kx = jax.random.split(key)
    params = init_params(kp)
    x = jax.random.normal(kx, (B, P, FC_IN), jnp.float32)
    fp = prepare_weights(params)

    run = jax.jit(inception_pallas)
    out = jax.block_until_ready(run(x, fp))

    ref = inception_reference(x, params)
    assert out.shape == (B, P, FC_IN)
    assert bool(jnp.all(jnp.isfinite(out)))
    assert bool(jnp.allclose(out, ref, atol=3e-2, rtol=3e-2))
    print("KERNEL_OK")
</pallas_src>

<mosaic_0001>
module attributes {stable_mosaic.version = 11 : i64} {
  func.func @_inception_fused_kernel(%arg0: i32, %arg1: memref<32x512xf32, #tpu.memory_space<vmem>>, %arg2: memref<512x256xbf16, #tpu.memory_space<vmem>>, %arg3: memref<1x256xf32, #tpu.memory_space<vmem>>, %arg4: memref<256x320xbf16, #tpu.memory_space<vmem>>, %arg5: memref<1x320xf32, #tpu.memory_space<vmem>>, %arg6: memref<384x128xbf16, #tpu.memory_space<vmem>>, %arg7: memref<1x128xf32, #tpu.memory_space<vmem>>, %arg8: memref<640x64xbf16, #tpu.memory_space<vmem>>, %arg9: memref<1x64xf32, #tpu.memory_space<vmem>>, %arg10: memref<256x512xbf16, #tpu.memory_space<vmem>>, %arg11: memref<1x512xf32, #tpu.memory_space<vmem>>, %arg12: memref<32x512xf32, #tpu.memory_space<vmem>>, %arg13: memref<48x256xf32, #tpu.memory_space<vmem>>) attributes {dimension_semantics = [#tpu.dimension_semantics<arbitrary>], iteration_bounds = array<i64: 1>, scalar_prefetch = 0 : i64, scratch_operands = 1 : i64, tpu.core_type = #tpu.core_type<tc>, window_params = [{pipeline_mode = #tpu.pipeline_mode<synchronous>, transform_indices = @transform_0, window_bounds = array<i64: 32, 512>}, {pipeline_mode = #tpu.pipeline_mode<synchronous>, transform_indices = @transform_1, window_bounds = array<i64: 512, 256>}, {pipeline_mode = #tpu.pipeline_mode<synchronous>, transform_indices = @transform_2, window_bounds = array<i64: 1, 256>}, {pipeline_mode = #tpu.pipeline_mode<synchronous>, transform_indices = @transform_3, window_bounds = array<i64: 256, 320>}, {pipeline_mode = #tpu.pipeline_mode<synchronous>, transform_indices = @transform_4, window_bounds = array<i64: 1, 320>}, {pipeline_mode = #tpu.pipeline_mode<synchronous>, transform_indices = @transform_5, window_bounds = array<i64: 384, 128>}, {pipeline_mode = #tpu.pipeline_mode<synchronous>, transform_indices = @transform_6, window_bounds = array<i64: 1, 128>}, {pipeline_mode = #tpu.pipeline_mode<synchronous>, transform_indices = @transform_7, window_bounds = array<i64: 640, 64>}, {pipeline_mode = #tpu.pipeline_mode<synchronous>, transform_indices = @transform_8, window_bounds = array<i64: 1, 64>}, {pipeline_mode = #tpu.pipeline_mode<synchronous>, transform_indices = @transform_9, window_bounds = array<i64: 256, 512>}, {pipeline_mode = #tpu.pipeline_mode<synchronous>, transform_indices = @transform_10, window_bounds = array<i64: 1, 512>}, {pipeline_mode = #tpu.pipeline_mode<synchronous>, transform_indices = @transform_11, window_bounds = array<i64: 32, 512>}]} {
    %c0 = arith.constant 0 : index
    %c0_0 = arith.constant 0 : index
    %0 = vector.load %arg1[%c0, %c0_0] : memref<32x512xf32, #tpu.memory_space<vmem>>, vector<32x512xf32>
    %1 = arith.truncf %0 : vector<32x512xf32> to vector<32x512xbf16>
    %c0_1 = arith.constant 0 : index
    %c0_2 = arith.constant 0 : index
    %2 = vector.load %arg2[%c0_1, %c0_2] : memref<512x256xbf16, #tpu.memory_space<vmem>>, vector<512x256xbf16>
    %cst = arith.constant dense<0.000000e+00> : vector<32x256xf32>
    %3 = tpu.matmul %1, %2, %cst {dimension_numbers = #tpu.dot_dimension_numbers<[1], [0], [0], [1], [0, 0, 1, 1], [], []>} : vector<32x512xbf16>, vector<512x256xbf16>, vector<32x256xf32> -> vector<32x256xf32>
    %c0_3 = arith.constant 0 : index
    %c0_4 = arith.constant 0 : index
    %4 = vector.load %arg3[%c0_3, %c0_4] : memref<1x256xf32, #tpu.memory_space<vmem>>, vector<1x256xf32>
    %5 = vector.broadcast %4 : vector<1x256xf32> to vector<32x256xf32>
    %6 = arith.addf %3, %5 : vector<32x256xf32>
    %cst_5 = arith.constant 0.000000e+00 : f32
    %7 = vector.broadcast %cst_5 : f32 to vector<32x256xf32>
    %8 = arith.maximumf %6, %7 : vector<32x256xf32>
    %9 = arith.truncf %8 : vector<32x256xf32> to vector<32x256xbf16>
    %c0_6 = arith.constant 0 : index
    %c0_7 = arith.constant 0 : index
    %10 = vector.load %arg4[%c0_6, %c0_7] : memref<256x320xbf16, #tpu.memory_space<vmem>>, vector<256x320xbf16>
    %cst_8 = arith.constant dense<0.000000e+00> : vector<32x320xf32>
    %11 = tpu.matmul %9, %10, %cst_8 {dimension_numbers = #tpu.dot_dimension_numbers<[1], [0], [0], [1], [0, 0, 1, 1], [], []>} : vector<32x256xbf16>, vector<256x320xbf16>, vector<32x320xf32> -> vector<32x320xf32>
    %c0_9 = arith.constant 0 : index
    %c0_10 = arith.constant 0 : index
    %12 = vector.load %arg5[%c0_9, %c0_10] : memref<1x320xf32, #tpu.memory_space<vmem>>, vector<1x320xf32>
    %13 = vector.broadcast %12 : vector<1x320xf32> to vector<32x320xf32>
    %14 = arith.addf %11, %13 : vector<32x320xf32>
    %cst_11 = arith.constant 0.000000e+00 : f32
    %15 = vector.broadcast %cst_11 : f32 to vector<32x320xf32>
    %16 = arith.maximumf %14, %15 : vector<32x320xf32>
    %17 = vector.extract_strided_slice %16 {offsets = [0, 0], sizes = [32, 256], strides = [1, 1]} : vector<32x320xf32> to vector<32x256xf32>
    %cst_12 = arith.constant 0.000000e+00 : f32
    %18 = vector.broadcast %cst_12 : f32 to vector<8x256xf32>
    %c0_13 = arith.constant 0 : index
    %c0_14 = arith.constant 0 : index
    %19 = vector.load %arg13[%c0_13, %c0_14] : memref<48x256xf32, #tpu.memory_space<vmem>>, vector<8x256xf32>
    tpu.vector_store %arg13[%c0_13, %c0_14], %18 {strides = array<i32>} : memref<48x256xf32, #tpu.memory_space<vmem>>, vector<8x256xf32>,
    %c40 = arith.constant 40 : index
    %c0_15 = arith.constant 0 : index
    %20 = vector.load %arg13[%c40, %c0_15] : memref<48x256xf32, #tpu.memory_space<vmem>>, vector<8x256xf32>
    tpu.vector_store %arg13[%c40, %c0_15], %18 {strides = array<i32>} : memref<48x256xf32, #tpu.memory_space<vmem>>, vector<8x256xf32>,
    %c8 = arith.constant 8 : index
    %c0_16 = arith.constant 0 : index
    %21 = vector.load %arg13[%c8, %c0_16] : memref<48x256xf32, #tpu.memory_space<vmem>>, vector<32x256xf32>
    tpu.vector_store %arg13[%c8, %c0_16], %17 {strides = array<i32>} : memref<48x256xf32, #tpu.memory_space<vmem>>, vector<32x256xf32>,
    %22 = tpu.iota {dimensions = array<i32: 0>} : vector<32x1xi32>
    %c15_i32 = arith.constant 15 : i32
    %23 = vector.broadcast %c15_i32 : i32 to vector<32x1xi32>
    %24 = arith.andi %22, %23 : vector<32x1xi32>
    %c7 = arith.constant 7 : index
    %c0_17 = arith.constant 0 : index
    %25 = vector.load %arg13[%c7, %c0_17] : memref<48x256xf32, #tpu.memory_space<vmem>>, vector<32x256xf32>
    %c-1_i32 = arith.constant -1 : i32
    %26 = vector.broadcast %c-1_i32 : i32 to vector<32x1xi32>
    %27 = arith.addi %24, %26 : vector<32x1xi32>
    %c0_i32 = arith.constant 0 : i32
    %28 = vector.broadcast %c0_i32 : i32 to vector<32x1xi32>
    %29 = arith.cmpi sge, %27, %28 : vector<32x1xi32>
    %c-1_i32_18 = arith.constant -1 : i32
    %30 = vector.broadcast %c-1_i32_18 : i32 to vector<32x1xi32>
    %31 = arith.addi %24, %30 : vector<32x1xi32>
    %c16_i32 = arith.constant 16 : i32
    %32 = vector.broadcast %c16_i32 : i32 to vector<32x1xi32>
    %33 = arith.cmpi slt, %31, %32 : vector<32x1xi32>
    %34 = arith.andi %29, %33 : vector<32x1xi1>
    %cst_19 = arith.constant 0.000000e+00 : f32
    %35 = vector.shape_cast %34 : vector<32x1xi1> to vector<32x1xi1>
    %36 = vector.broadcast %35 : vector<32x1xi1> to vector<32x256xi1>
    %37 = vector.broadcast %cst_19 : f32 to vector<32x256xf32>
    %38 = arith.select %36, %25, %37 : vector<32x256xi1>, vector<32x256xf32>
    %c9 = arith.constant 9 : index
    %c0_20 = arith.constant 0 : index
    %39 = vector.load %arg13[%c9, %c0_20] : memref<48x256xf32, #tpu.memory_space<vmem>>, vector<32x256xf32>
    %c1_i32 = arith.constant 1 : i32
    %40 = vector.broadcast %c1_i32 : i32 to vector<32x1xi32>
    %41 = arith.addi %24, %40 : vector<32x1xi32>
    %c0_i32_21 = arith.constant 0 : i32
    %42 = vector.broadcast %c0_i32_21 : i32 to vector<32x1xi32>
    %43 = arith.cmpi sge, %41, %42 : vector<32x1xi32>
    %c1_i32_22 = arith.constant 1 : i32
    %44 = vector.broadcast %c1_i32_22 : i32 to vector<32x1xi32>
    %45 = arith.addi %24, %44 : vector<32x1xi32>
    %c16_i32_23 = arith.constant 16 : i32
    %46 = vector.broadcast %c16_i32_23 : i32 to vector<32x1xi32>
    %47 = arith.cmpi slt, %45, %46 : vector<32x1xi32>
    %48 = arith.andi %43, %47 : vector<32x1xi1>
    %cst_24 = arith.constant 0.000000e+00 : f32
    %49 = vector.shape_cast %48 : vector<32x1xi1> to vector<32x1xi1>
    %50 = vector.broadcast %49 : vector<32x1xi1> to vector<32x256xi1>
    %51 = vector.broadcast %cst_24 : f32 to vector<32x256xf32>
    %52 = arith.select %50, %39, %51 : vector<32x256xi1>, vector<32x256xf32>
    %c6 = arith.constant 6 : index
    %c128 = arith.constant 128 : index
    %53 = vector.load %arg13[%c6, %c128] : memref<48x256xf32, #tpu.memory_space<vmem>>, vector<32x128xf32>
    %c-2_i32 = arith.constant -2 : i32
    %54 = vector.broadcast %c-2_i32 : i32 to vector<32x1xi32>
    %55 = arith.addi %24, %54 : vector<32x1xi32>
    %c0_i32_25 = arith.constant 0 : i32
    %56 = vector.broadcast %c0_i32_25 : i32 to vector<32x1xi32>
    %57 = arith.cmpi sge, %55, %56 : vector<32x1xi32>
    %c-2_i32_26 = arith.constant -2 : i32
    %58 = vector.broadcast %c-2_i32_26 : i32 to vector<32x1xi32>
    %59 = arith.addi %24, %58 : vector<32x1xi32>
    %c16_i32_27 = arith.constant 16 : i32
    %60 = vector.broadcast %c16_i32_27 : i32 to vector<32x1xi32>
    %61 = arith.cmpi slt, %59, %60 : vector<32x1xi32>
    %62 = arith.andi %57, %61 : vector<32x1xi1>
    %cst_28 = arith.constant 0.000000e+00 : f32
    %63 = vector.shape_cast %62 : vector<32x1xi1> to vector<32x1xi1>
    %64 = vector.broadcast %63 : vector<32x1xi1> to vector<32x128xi1>
    %65 = vector.broadcast %cst_28 : f32 to vector<32x128xf32>
    %66 = arith.select %64, %53, %65 : vector<32x128xi1>, vector<32x128xf32>
    %c10 = arith.constant 10 : index
    %c128_29 = arith.constant 128 : index
    %67 = vector.load %arg13[%c10, %c128_29] : memref<48x256xf32, #tpu.memory_space<vmem>>, vector<32x128xf32>
    %c2_i32 = arith.constant 2 : i32
    %68 = vector.broadcast %c2_i32 : i32 to vector<32x1xi32>
    %69 = arith.addi %24, %68 : vector<32x1xi32>
    %c0_i32_30 = arith.constant 0 : i32
    %70 = vector.broadcast %c0_i32_30 : i32 to vector<32x1xi32>
    %71 = arith.cmpi sge, %69, %70 : vector<32x1xi32>
    %c2_i32_31 = arith.constant 2 : i32
    %72 = vector.broadcast %c2_i32_31 : i32 to vector<32x1xi32>
    %73 = arith.addi %24, %72 : vector<32x1xi32>
    %c16_i32_32 = arith.constant 16 : i32
    %74 = vector.broadcast %c16_i32_32 : i32 to vector<32x1xi32>
    %75 = arith.cmpi slt, %73, %74 : vector<32x1xi32>
    %76 = arith.andi %71, %75 : vector<32x1xi1>
    %cst_33 = arith.constant 0.000000e+00 : f32
    %77 = vector.shape_cast %76 : vector<32x1xi1> to vector<32x1xi1>
    %78 = vector.broadcast %77 : vector<32x1xi1> to vector<32x128xi1>
    %79 = vector.broadcast %cst_33 : f32 to vector<32x128xf32>
    %80 = arith.select %78, %67, %79 : vector<32x128xi1>, vector<32x128xf32>
    %81 = vector.extract_strided_slice %38 {offsets = [0, 0], sizes = [32, 128], strides = [1, 1]} : vector<32x256xf32> to vector<32x128xf32>
    %82 = vector.extract_strided_slice %17 {offsets = [0, 0], sizes = [32, 128], strides = [1, 1]} : vector<32x256xf32> to vector<32x128xf32>
    %83 = vector.extract_strided_slice %52 {offsets = [0, 0], sizes = [32, 128], strides = [1, 1]} : vector<32x256xf32> to vector<32x128xf32>
    %84 = tpu.concatenate %81, %82, %83 in 1 : vector<32x128xf32>, vector<32x128xf32>, vector<32x128xf32> -> vector<32x384xf32>
    %85 = arith.truncf %84 : vector<32x384xf32> to vector<32x384xbf16>
    %c0_34 = arith.constant 0 : index
    %c0_35 = arith.constant 0 : index
    %86 = vector.load %arg6[%c0_34, %c0_35] : memref<384x128xbf16, #tpu.memory_space<vmem>>, vector<384x128xbf16>
    %cst_36 = arith.constant dense<0.000000e+00> : vector<32x128xf32>
    %87 = tpu.matmul %85, %86, %cst_36 {dimension_numbers = #tpu.dot_dimension_numbers<[1], [0], [0], [1], [0, 0, 1, 1], [], []>} : vector<32x384xbf16>, vector<384x128xbf16>, vector<32x128xf32> -> vector<32x128xf32>
    %c0_37 = arith.constant 0 : index
    %c0_38 = arith.constant 0 : index
    %88 = vector.load %arg7[%c0_37, %c0_38] : memref<1x128xf32, #tpu.memory_space<vmem>>, vector<1x128xf32>
    %89 = vector.broadcast %88 : vector<1x128xf32> to vector<32x128xf32>
    %90 = arith.addf %87, %89 : vector<32x128xf32>
    %cst_39 = arith.constant 0.000000e+00 : f32
    %91 = vector.broadcast %cst_39 : f32 to vector<32x128xf32>
    %92 = arith.maximumf %90, %91 : vector<32x128xf32>
    %93 = vector.extract_strided_slice %38 {offsets = [0, 128], sizes = [32, 128], strides = [1, 1]} : vector<32x256xf32> to vector<32x128xf32>
    %94 = vector.extract_strided_slice %17 {offsets = [0, 128], sizes = [32, 128], strides = [1, 1]} : vector<32x256xf32> to vector<32x128xf32>
    %95 = vector.extract_strided_slice %52 {offsets = [0, 128], sizes = [32, 128], strides = [1, 1]} : vector<32x256xf32> to vector<32x128xf32>
    %96 = tpu.concatenate %66, %93, %94, %95, %80 in 1 : vector<32x128xf32>, vector<32x128xf32>, vector<32x128xf32>, vector<32x128xf32>, vector<32x128xf32> -> vector<32x640xf32>
    %97 = arith.truncf %96 : vector<32x640xf32> to vector<32x640xbf16>
    %c0_40 = arith.constant 0 : index
    %c0_41 = arith.constant 0 : index
    %98 = vector.load %arg8[%c0_40, %c0_41] : memref<640x64xbf16, #tpu.memory_space<vmem>>, vector<640x64xbf16>
    %cst_42 = arith.constant dense<0.000000e+00> : vector<32x64xf32>
    %99 = tpu.matmul %97, %98, %cst_42 {dimension_numbers = #tpu.dot_dimension_numbers<[1], [0], [0], [1], [0, 0, 1, 1], [], []>} : vector<32x640xbf16>, vector<640x64xbf16>, vector<32x64xf32> -> vector<32x64xf32>
    %c0_43 = arith.constant 0 : index
    %c0_44 = arith.constant 0 : index
    %100 = vector.load %arg9[%c0_43, %c0_44] : memref<1x64xf32, #tpu.memory_space<vmem>>, vector<1x64xf32>
    %101 = vector.broadcast %100 : vector<1x64xf32> to vector<32x64xf32>
    %102 = arith.addf %99, %101 : vector<32x64xf32>
    %cst_45 = arith.constant 0.000000e+00 : f32
    %103 = vector.broadcast %cst_45 : f32 to vector<32x64xf32>
    %104 = arith.maximumf %102, %103 : vector<32x64xf32>
    %105 = vector.extract_strided_slice %16 {offsets = [0, 256], sizes = [32, 64], strides = [1, 1]} : vector<32x320xf32> to vector<32x64xf32>
    %106 = tpu.concatenate %92, %104, %105 in 1 : vector<32x128xf32>, vector<32x64xf32>, vector<32x64xf32> -> vector<32x256xf32>
    %107 = arith.addf %8, %106 : vector<32x256xf32>
    %108 = arith.truncf %107 : vector<32x256xf32> to vector<32x256xbf16>
    %c0_46 = arith.constant 0 : index
    %c0_47 = arith.constant 0 : index
    %109 = vector.load %arg10[%c0_46, %c0_47] : memref<256x512xbf16, #tpu.memory_space<vmem>>, vector<256x512xbf16>
    %cst_48 = arith.constant dense<0.000000e+00> : vector<32x512xf32>
    %110 = tpu.matmul %108, %109, %cst_48 {dimension_numbers = #tpu.dot_dimension_numbers<[1], [0], [0], [1], [0, 0, 1, 1], [], []>} : vector<32x256xbf16>, vector<256x512xbf16>, vector<32x512xf32> -> vector<32x512xf32>
    %c0_49 = arith.constant 0 : index
    %c0_50 = arith.constant 0 : index
    %111 = vector.load %arg11[%c0_49, %c0_50] : memref<1x512xf32, #tpu.memory_space<vmem>>, vector<1x512xf32>
    %112 = vector.broadcast %111 : vector<1x512xf32> to vector<32x512xf32>
    %113 = arith.addf %110, %112 : vector<32x512xf32>
    %c0_51 = arith.constant 0 : index
    %c0_52 = arith.constant 0 : index
    %114 = vector.load %arg12[%c0_51, %c0_52] : memref<32x512xf32, #tpu.memory_space<vmem>>, vector<32x512xf32>
    tpu.vector_store %arg12[%c0_51, %c0_52], %113 {strides = array<i32>} : memref<32x512xf32, #tpu.memory_space<vmem>>, vector<32x512xf32>,
    return
  }
  func.func @transform_0(%arg0: i32) -> (i32, i32) {
    %c0_i32 = arith.constant 0 : i32
    %c0_i32_0 = arith.constant 0 : i32
    %c0_i32_1 = arith.constant 0 : i32
    return %c0_i32, %c0_i32_0 : i32, i32
  }
  func.func @transform_1(%arg0: i32) -> (i32, i32) {
    %c0_i32 = arith.constant 0 : i32
    %c0_i32_0 = arith.constant 0 : i32
    %c0_i32_1 = arith.constant 0 : i32
    return %c0_i32, %c0_i32_0 : i32, i32
  }
  func.func @transform_2(%arg0: i32) -> (i32, i32) {
    %c0_i32 = arith.constant 0 : i32
    %c0_i32_0 = arith.constant 0 : i32
    %c0_i32_1 = arith.constant 0 : i32
    return %c0_i32, %c0_i32_0 : i32, i32
  }
  func.func @transform_3(%arg0: i32) -> (i32, i32) {
    %c0_i32 = arith.constant 0 : i32
    %c0_i32_0 = arith.constant 0 : i32
    %c0_i32_1 = arith.constant 0 : i32
    return %c0_i32, %c0_i32_0 : i32, i32
  }
  func.func @transform_4(%arg0: i32) -> (i32, i32) {
    %c0_i32 = arith.constant 0 : i32
    %c0_i32_0 = arith.constant 0 : i32
    %c0_i32_1 = arith.constant 0 : i32
    return %c0_i32, %c0_i32_0 : i32, i32
  }
  func.func @transform_5(%arg0: i32) -> (i32, i32) {
    %c0_i32 = arith.constant 0 : i32
    %c0_i32_0 = arith.constant 0 : i32
    %c0_i32_1 = arith.constant 0 : i32
    return %c0_i32, %c0_i32_0 : i32, i32
  }
  func.func @transform_6(%arg0: i32) -> (i32, i32) {
    %c0_i32 = arith.constant 0 : i32
    %c0_i32_0 = arith.constant 0 : i32
    %c0_i32_1 = arith.constant 0 : i32
    return %c0_i32, %c0_i32_0 : i32, i32
  }
  func.func @transform_7(%arg0: i32) -> (i32, i32) {
    %c0_i32 = arith.constant 0 : i32
    %c0_i32_0 = arith.constant 0 : i32
    %c0_i32_1 = arith.constant 0 : i32
    return %c0_i32, %c0_i32_0 : i32, i32
  }
  func.func @transform_8(%arg0: i32) -> (i32, i32) {
    %c0_i32 = arith.constant 0 : i32
    %c0_i32_0 = arith.constant 0 : i32
    %c0_i32_1 = arith.constant 0 : i32
    return %c0_i32, %c0_i32_0 : i32, i32
  }
  func.func @transform_9(%arg0: i32) -> (i32, i32) {
    %c0_i32 = arith.constant 0 : i32
    %c0_i32_0 = arith.constant 0 : i32
    %c0_i32_1 = arith.constant 0 : i32
    return %c0_i32, %c0_i32_0 : i32, i32
  }
  func.func @transform_10(%arg0: i32) -> (i32, i32) {
    %c0_i32 = arith.constant 0 : i32
    %c0_i32_0 = arith.constant 0 : i32
    %c0_i32_1 = arith.constant 0 : i32
    return %c0_i32, %c0_i32_0 : i32, i32
  }
  func.func @transform_11(%arg0: i32) -> (i32, i32) {
    %c0_i32 = arith.constant 0 : i32
    %c0_i32_0 = arith.constant 0 : i32
    %c0_i32_1 = arith.constant 0 : i32
    return %c0_i32, %c0_i32_0 : i32, i32
  }
}

</mosaic_0001>

<bundles_post_ra>
// kernel: inception_pallas.1
= control target key start
LH: loop header
LB: loop body
LE: loop exit
PB: predicated region body
PF: predicated region fallthrough
CT: control target
= control target key end

     0   :  { %vm1093_vm0 = vcmask 1040384   ;;  %vm1235_vm1 = vcmask 1041408   ;;  %vm1172_vm3 = vcmask 1046528   ;;  %vm3449_vm6 = vmmov 1   ;;  %s3450_s12 = smov 64   ;;  %s4695_s1 = inlined_call_operand.vmem [shape: bf16[512,256], index: 1, kind: input, shape index: {}]   ;;  %s4696_s0 = inlined_call_operand.vmem [shape: f32[32,512], index: 0, kind: input, shape index: {}]   ;;  %s4697_s3 = inlined_call_operand.vmem [shape: bf16[256,320], index: 3, kind: input, shape index: {}]   ;;  %s4698_s5 = inlined_call_operand.vmem [shape: bf16[384,128], index: 5, kind: input, shape index: {}]   ;;  %s4699_s2 = inlined_call_operand.vmem [shape: f32[1,256], index: 2, kind: input, shape index: {}]   ;;  %s4700_s7 = inlined_call_operand.vmem [shape: bf16[640,64], index: 7, kind: input, shape index: {}]   ;;  %s4701_s4 = inlined_call_operand.vmem [shape: f32[1,320], index: 4, kind: input, shape index: {}]   ;;  %s4702_s9 = inlined_call_operand.vmem [shape: bf16[256,512], index: 9, kind: input, shape index: {}]   ;;  %s4703_s6 = inlined_call_operand.vmem [shape: f32[1,128], index: 6, kind: input, shape index: {}]   ;;  %s4704_s8 = inlined_call_operand.vmem [shape: f32[1,64], index: 8, kind: input, shape index: {}]   ;;  %s4705_s10 = inlined_call_operand.vmem [shape: f32[1,512], index: 10, kind: input, shape index: {}]   ;;  %s4706_s11 = inlined_call_operand.vmem [shape: f32[32,512], index: 11, kind: output, shape index: {}]  }
   0x1   :  { %v3128_v0 = vld [vmem:[%s4695_s1 + $0x4] ss:$8 sps:$4 sm:$0xff]   ;;  %v3130_v1 = vld [vmem:[%s4695_s1] ss:$8 sps:$4 sm:$0xff]   ;;  %v3131_v2 = vld [vmem:[%s4695_s1 + $0x14] ss:$8 sps:$4 sm:$0xff]  }
   0x2   :  { %459 = vmatprep.subr.bf16.mxu0 %v3128_v0  ;;  %v3133_v3 = vld [vmem:[%s4695_s1 + $0x10] ss:$8 sps:$4 sm:$0xff]   ;;  %v3134_v4 = vld [vmem:[%s4695_s1 + $0x24] ss:$8 sps:$4 sm:$0xff]   ;;  %v3136_v5 = vld [vmem:[%s4695_s1 + $0x20] ss:$8 sps:$4 sm:$0xff]  }
   0x3   :  { %460 = vmatpush1.bf16.msra.mxu0 %v3130_v1  ;;  %v3137_v6 = vld [vmem:[%s4695_s1 + $0x34] ss:$8 sps:$4 sm:$0xff]   ;;  %v3139_v7 = vld [vmem:[%s4695_s1 + $0x30] ss:$8 sps:$4 sm:$0xff]   ;;  %v3140_v8 = vld [vmem:[%s4695_s1 + $0x44] ss:$8 sps:$4 sm:$0xff]  }
   0x4   :  { %461 = vmatprep.subr.bf16.mxu0 %v3131_v2  ;;  %v3142_v9 = vld [vmem:[%s4695_s1 + $0x40] ss:$8 sps:$4 sm:$0xff]   ;;  %v3143_v10 = vld [vmem:[%s4695_s1 + $0x54] ss:$8 sps:$4 sm:$0xff]   ;;  %v3145_v11 = vld [vmem:[%s4695_s1 + $0x50] ss:$8 sps:$4 sm:$0xff]  }
   0x5   :  { %v3146_v12 = vld [vmem:[%s4695_s1 + $0x64] ss:$8 sps:$4 sm:$0xff]   ;;  %v3148_v16 = vld [vmem:[%s4695_s1 + $0x60] ss:$8 sps:$4 sm:$0xff]   ;;  %v3149_v17 = vld [vmem:[%s4695_s1 + $0x74] ss:$8 sps:$4 sm:$0xff]  }
   0x6   :  { %v40_v13 = vld [vmem:[%s4696_s0 + $0x8] sm:$0xff]  ;;  %v3151_v18 = vld [vmem:[%s4695_s1 + $0x70] ss:$8 sps:$4 sm:$0xff]   ;;  %v3155_v21 = vld [vmem:[%s4695_s1 + $0x94] ss:$8 sps:$4 sm:$0xff]   ;;  %vm1281_vm8 = vcmask 1045504  }
   0x7   :  { %462 = vmatpush1.bf16.msra.mxu0 %v3133_v3  ;;  %v44_v14 = vld [vmem:[%s4696_s0 + $0x28] sm:$0xff]  ;;  %v3157_v22 = vld [vmem:[%s4695_s1 + $0x90] ss:$8 sps:$4 sm:$0xff]   ;;  %v3161_v25 = vld [vmem:[%s4695_s1 + $0xb4] ss:$8 sps:$4 sm:$0xff]  }
   0x8   :  { %463 = vmatprep.subr.bf16.mxu0 %v3134_v4  ;;  %v56_v15 = vpack.c.bf16 %v44_v14, %v40_v13  ;;  %v3152_v19 = vld [vmem:[%s4695_s1 + $0x84] ss:$8 sps:$4 sm:$0xff]   ;;  %v3154_v20 = vld [vmem:[%s4695_s1 + $0x80] ss:$8 sps:$4 sm:$0xff]   ;;  %v3163_v26 = vld [vmem:[%s4695_s1 + $0xb0] ss:$8 sps:$4 sm:$0xff]  }
   0x9   :  { %v3158_v23 = vld [vmem:[%s4695_s1 + $0xa4] ss:$8 sps:$4 sm:$0xff]   ;;  %v3160_v24 = vld [vmem:[%s4695_s1 + $0xa0] ss:$8 sps:$4 sm:$0xff]   ;;  %v3167_v29 = vld [vmem:[%s4695_s1 + $0xd4] ss:$8 sps:$4 sm:$0xff]  }
   0xa   :  { %491 = vmatprep.mubr.bf16.mxu0 %v56_v15  ;;  %v3164_v27 = vld [vmem:[%s4695_s1 + $0xc4] ss:$8 sps:$4 sm:$0xff]   ;;  %v3166_v28 = vld [vmem:[%s4695_s1 + $0xc0] ss:$8 sps:$4 sm:$0xff]   ;;  %v3169_v32 = vld [vmem:[%s4695_s1 + $0xd0] ss:$8 sps:$4 sm:$0xff]  }
   0xb   :  { %464 = vmatpush1.bf16.msra.mxu0 %v3136_v5  ;;  %v3224_v30 = vld [vmem:[%s4697_s3 + $0x4] ss:$12 sps:$4 sm:$0xff]   ;;  %v3226_v31 = vld [vmem:[%s4697_s3] ss:$12 sps:$4 sm:$0xff]   ;;  %v3227_v33 = vld [vmem:[%s4697_s3 + $0x1c] ss:$12 sps:$4 sm:$0xff]  }
   0xc   :  { %465 = vmatprep.subr.bf16.mxu0 %v3137_v6  ;;  %914 = vmatprep.subr.bf16.mxu1 %v3224_v30  ;;  %v3170_v34 = vld [vmem:[%s4695_s1 + $0xe4] ss:$8 sps:$4 sm:$0xff]   ;;  %v3230_v36 = vld [vmem:[%s4697_s3 + $0x34] ss:$12 sps:$4 sm:$0xff]   ;;  %v3232_v39 = vld [vmem:[%s4697_s3 + $0x30] ss:$12 sps:$4 sm:$0xff]  }
   0xd   :  { %915 = vmatpush1.bf16.msra.mxu1 %v3226_v31  ;;  %v3229_v35 = vld [vmem:[%s4697_s3 + $0x18] ss:$12 sps:$4 sm:$0xff]   ;;  %v3172_v37 = vld [vmem:[%s4695_s1 + $0xe0] ss:$8 sps:$4 sm:$0xff]   ;;  %v3173_v38 = vld [vmem:[%s4695_s1 + $0xf4] ss:$8 sps:$4 sm:$0xff]  }
   0xe   :  { %916 = vmatprep.subr.bf16.mxu1 %v3227_v33  ;;  %v3233_v40 = vld [vmem:[%s4697_s3 + $0x4c] ss:$12 sps:$4 sm:$0xff]   ;;  %v39_v42 = vld [vmem:[%s4696_s0] sm:$0xff]  ;;  %v3235_v47 = vld [vmem:[%s4697_s3 + $0x48] ss:$12 sps:$4 sm:$0xff]  }
   0xf   :  { %466 = vmatpush1.bf16.msra.mxu0 %v3139_v7  ;;  %v3175_v41 = vld [vmem:[%s4695_s1 + $0xf0] ss:$8 sps:$4 sm:$0xff]   ;;  %v3178_v43 = vld [vmem:[%s4695_s1 + $0x104] ss:$8 sps:$4 sm:$0xff]   ;;  %v3176_v50 = vld [vmem:[%s4695_s1 + $0x100] ss:$8 sps:$4 sm:$0xff]  }
  0x10   :  { %467 = vmatprep.subr.bf16.mxu0 %v3140_v8  ;;  %v43_v44 = vld [vmem:[%s4696_s0 + $0x20] sm:$0xff]  ;;  %v48_v45 = vld [vmem:[%s4696_s0 + $0x48] sm:$0xff]  ;;  %v3181_v51 = vld [vmem:[%s4695_s1 + $0x114] ss:$8 sps:$4 sm:$0xff]  }
  0x11   :  { %917 = vmatpush1.bf16.msra.mxu1 %v3229_v35  ;;  %v52_v46 = vld [vmem:[%s4696_s0 + $0x68] sm:$0xff]  ;;  %v3236_v48 = vld [vmem:[%s4697_s3 + $0x64] ss:$12 sps:$4 sm:$0xff]   ;;  %v55_v49 = vpack.c.bf16 %v43_v44, %v39_v42  ;;  %v42_v59 = vld [vmem:[%s4696_s0 + $0x18] sm:$0xff] }
  0x12   :  { %918 = vmatprep.subr.bf16.mxu1 %v3230_v36  ;;  %v60_v52 = vpack.c.bf16 %v52_v46, %v48_v45  ;;  %v3238_v53 = vld [vmem:[%s4697_s3 + $0x60] ss:$12 sps:$4 sm:$0xff]   ;;  %v3179_v54 = vld [vmem:[%s4695_s1 + $0x110] ss:$8 sps:$4 sm:$0xff]   ;;  %v3239_v57 = vld [vmem:[%s4697_s3 + $0x7c] ss:$12 sps:$4 sm:$0xff]  }
  0x13   :  { %468 = vmatpush1.bf16.msra.mxu0 %v3142_v9  ;;  %v47_v55 = vld [vmem:[%s4696_s0 + $0x40] sm:$0xff]  ;;  %v46_v60 = vld [vmem:[%s4696_s0 + $0x38] sm:$0xff]  ;;  %v3247_v7 = vld [vmem:[%s4697_s3 + $0xa8] ss:$12 sps:$4 sm:$0xff]  }
  0x14   :  { %469 = vmatprep.subr.bf16.mxu0 %v3143_v10  ;;  %v51_v56 = vld [vmem:[%s4696_s0 + $0x60] sm:$0xff]  ;;  %v3187_v0 = vld [vmem:[%s4695_s1 + $0x134] ss:$8 sps:$4 sm:$0xff]   ;;  %v58_v3 = vpack.c.bf16 %v46_v60, %v42_v59  ;;  %v3245_v4 = vld [vmem:[%s4697_s3 + $0xac] ss:$12 sps:$4 sm:$0xff]   ;;  %v129_v59 = vlaneseq }
  0x15   :  { %919 = vmatpush1.bf16.msra.mxu1 %v3232_v39  ;;  %v3184_v58 = vld [vmem:[%s4695_s1 + $0x124] ss:$8 sps:$4 sm:$0xff]   ;;  %v3242_v62 = vld [vmem:[%s4697_s3 + $0x94] ss:$12 sps:$4 sm:$0xff]   ;;  %v59_v1 = vpack.c.bf16 %v51_v56, %v47_v55  ;;  %v3244_v2 = vld [vmem:[%s4697_s3 + $0x90] ss:$12 sps:$4 sm:$0xff]  }
  0x16   :  { %920 = vmatprep.subr.bf16.mxu1 %v3233_v40  ;;  %v3241_v61 = vld [vmem:[%s4697_s3 + $0x78] ss:$12 sps:$4 sm:$0xff]   ;;  %v3182_v63 = vld [vmem:[%s4695_s1 + $0x120] ss:$8 sps:$4 sm:$0xff]   ;;  %v3193_v10 = vld [vmem:[%s4695_s1 + $0x154] ss:$8 sps:$4 sm:$0xff]  }
  0x17   :  { %470 = vmatpush1.bf16.msra.mxu0 %v3145_v11  ;;  %v3185_v5 = vld [vmem:[%s4695_s1 + $0x130] ss:$8 sps:$4 sm:$0xff]   ;;  %v3190_v6 = vld [vmem:[%s4695_s1 + $0x144] ss:$8 sps:$4 sm:$0xff]   ;;  %v3188_v9 = vld [vmem:[%s4695_s1 + $0x140] ss:$8 sps:$4 sm:$0xff]  }
  0x18   :  { %471 = vmatprep.subr.bf16.mxu0 %v3146_v12  ;;  %v3248_v8 = vld [vmem:[%s4697_s3 + $0xc4] ss:$12 sps:$4 sm:$0xff]   ;;  %v3250_v11 = vld [vmem:[%s4697_s3 + $0xc0] ss:$12 sps:$4 sm:$0xff]   ;;  %v3251_v12 = vld [vmem:[%s4697_s3 + $0xdc] ss:$12 sps:$4 sm:$0xff]  }
  0x19   :  { %921 = vmatpush1.bf16.msra.mxu1 %v3235_v47  ;;  %v3191_v13 = vld [vmem:[%s4695_s1 + $0x150] ss:$8 sps:$4 sm:$0xff]   ;;  %v3196_v14 = vld [vmem:[%s4695_s1 + $0x164] ss:$8 sps:$4 sm:$0xff]   ;;  %v3211_v33 = vld [vmem:[%s4695_s1 + $0x1b4] ss:$8 sps:$4 sm:$0xff]  }
  0x1a   :  { %922 = vmatprep.subr.bf16.mxu1 %v3236_v48  ;;  %v3253_v15 = vld [vmem:[%s4697_s3 + $0xd8] ss:$12 sps:$4 sm:$0xff]   ;;  %v3212_v36 = vld [vmem:[%s4695_s1 + $0x1c0] ss:$8 sps:$4 sm:$0xff]   ;;  %v45_v44 = vld [vmem:[%s4696_s0 + $0x30] sm:$0xff]  ;;  %v3856_v60 = vshrl.u32 %v129_v59, 7 }
  0x1b   :  { %472 = vmatpush1.bf16.msra.mxu0 %v3148_v16  ;;  %v3254_v16 = vld [vmem:[%s4697_s3 + $0xf4] ss:$12 sps:$4 sm:$0xff]   ;;  %v3208_v30 = vld [vmem:[%s4695_s1 + $0x1a4] ss:$8 sps:$4 sm:$0xff]   ;;  %v3221_v42 = vld [vmem:[%s4695_s1 + $0x1f0] ss:$8 sps:$4 sm:$0xff]  }
  0x1c   :  { %473 = vmatprep.subr.bf16.mxu0 %v3149_v17  ;;  %v3194_v17 = vld [vmem:[%s4695_s1 + $0x160] ss:$8 sps:$4 sm:$0xff]   ;;  %v3265_v31 = vld [vmem:[%s4697_s3 + $0x138] ss:$12 sps:$4 sm:$0xff]  }
  0x1d   :  { %923 = vmatpush1.bf16.msra.mxu1 %v3238_v53  ;;  %v3214_v35 = vld [vmem:[%s4695_s1 + $0x1c4] ss:$8 sps:$4 sm:$0xff]   ;;  %v3218_v40 = vld [vmem:[%s4695_s1 + $0x1e0] ss:$8 sps:$4 sm:$0xff]   ;;  %v50_v45 = vld [vmem:[%s4696_s0 + $0x58] sm:$0xff] }
  0x1e   :  { %924 = vmatprep.subr.bf16.mxu1 %v3239_v57  ;;  %v3220_v39 = vld [vmem:[%s4695_s1 + $0x1e4] ss:$8 sps:$4 sm:$0xff]   ;;  %v54_v46 = vld [vmem:[%s4696_s0 + $0x78] sm:$0xff]  ;;  %v3271_v55 = vld [vmem:[%s4697_s3 + $0x168] ss:$12 sps:$4 sm:$0xff]  }
  0x1f   :  { %474 = vmatpush1.bf16.msra.mxu0 %v3151_v18  ;;  %v3199_v18 = vld [vmem:[%s4695_s1 + $0x174] ss:$8 sps:$4 sm:$0xff]   ;;  %v62_v48 = vpack.c.bf16 %v54_v46, %v50_v45  ;;  %v3293_v57 = vld [vmem:[%s4698_s5 + $0x80] sm:$0xff]   ;;  %v3303_v59 = vld [vmem:[%s4698_s5 + $0x28] sm:$0xff]  }
  0x20   :  { %475 = vmatprep.subr.bf16.mxu0 %v3152_v19  ;;  %v3256_v19 = vld [vmem:[%s4697_s3 + $0xf0] ss:$12 sps:$4 sm:$0xff]   ;;  %v3272_v56 = vld [vmem:[%s4697_s3 + $0xc8] ss:$12 sps:$4 sm:$0xff]   ;;  %v3288_v45 = vld [vmem:[%s4698_s5 + $0x40] sm:$0xff]  }
  0x21   :  { %925 = vmatpush1.bf16.msra.mxu1 %v3241_v61  ;;  %v3268_v53 = vld [vmem:[%s4697_s3 + $0x150] ss:$12 sps:$4 sm:$0xff]   ;;  %v3859_v61 = vsub.s32 1, %v3856_v60  ;;  %v3289_v46 = vld [vmem:[%s4698_s5] sm:$0xff]  }
  0x22   :  { %926 = vmatprep.subr.bf16.mxu1 %v3242_v62  ;;  %v127_v62 = vld [vmem:[%s4699_s2] sm:$0x3] }
  0x23   :  { %476 = vmatpush1.bf16.msra.mxu0 %v3154_v20  ;;  %v3257_v20 = vld [vmem:[%s4697_s3 + $0x10c] ss:$12 sps:$4 sm:$0xff]  }
  0x24   :  { %477 = vmatprep.subr.bf16.mxu0 %v3155_v21  ;;  %v3197_v21 = vld [vmem:[%s4695_s1 + $0x170] ss:$8 sps:$4 sm:$0xff]  }
  0x25   :  { %927 = vmatpush1.bf16.msra.mxu1 %v3244_v2 }
  0x26   :  { %928 = vmatprep.subr.bf16.mxu1 %v3245_v4 }
  0x27   :  { %478 = vmatpush1.bf16.msra.mxu0 %v3157_v22  ;;  %v3202_v22 = vld [vmem:[%s4695_s1 + $0x184] ss:$8 sps:$4 sm:$0xff]  }
  0x28   :  { %479 = vmatprep.subr.bf16.mxu0 %v3158_v23  ;;  %v3259_v23 = vld [vmem:[%s4697_s3 + $0x108] ss:$12 sps:$4 sm:$0xff]  }
  0x29   :  { %929 = vmatpush1.bf16.msra.mxu1 %v3247_v7 }
  0x2a   :  { %930 = vmatprep.subr.bf16.mxu1 %v3248_v8 }
  0x2b   :  { %480 = vmatpush1.bf16.msra.mxu0 %v3160_v24  ;;  %v3260_v24 = vld [vmem:[%s4697_s3 + $0x124] ss:$12 sps:$4 sm:$0xff]  }
  0x2c   :  { %481 = vmatprep.subr.bf16.mxu0 %v3161_v25  ;;  %v3200_v25 = vld [vmem:[%s4695_s1 + $0x180] ss:$8 sps:$4 sm:$0xff]  }
  0x2d   :  { %931 = vmatpush1.bf16.msra.mxu1 %v3250_v11 }
  0x2e   :  { %932 = vmatprep.subr.bf16.mxu1 %v3251_v12 }
  0x2f   :  { %482 = vmatpush1.bf16.msra.mxu0 %v3163_v26  ;;  %v3205_v26 = vld [vmem:[%s4695_s1 + $0x194] ss:$8 sps:$4 sm:$0xff]  }
  0x30   :  { %483 = vmatprep.subr.bf16.mxu0 %v3164_v27  ;;  %v3262_v27 = vld [vmem:[%s4697_s3 + $0x120] ss:$12 sps:$4 sm:$0xff]  }
  0x31   :  { %933 = vmatpush1.bf16.msra.mxu1 %v3253_v15 }
  0x32   :  { %934 = vmatprep.subr.bf16.mxu1 %v3254_v16  ;;  %v3273_v16 = vld [vmem:[%s4697_s3 + $0x8] ss:$12 sps:$4 sm:$0xff]  }
  0x33   :  { %484 = vmatpush1.bf16.msra.mxu0 %v3166_v28  ;;  %v3263_v28 = vld [vmem:[%s4697_s3 + $0x13c] ss:$12 sps:$4 sm:$0xff]  }
  0x34   :  { %485 = vmatprep.subr.bf16.mxu0 %v3167_v29  ;;  %v3203_v29 = vld [vmem:[%s4695_s1 + $0x190] ss:$8 sps:$4 sm:$0xff]  }
  0x35   :  { %935 = vmatpush1.bf16.msra.mxu1 %v3256_v19  ;;  %v3274_v19 = vld [vmem:[%s4697_s3 + $0xe0] ss:$12 sps:$4 sm:$0xff]  }
  0x36   :  { %936 = vmatprep.subr.bf16.mxu1 %v3257_v20 }
  0x37   :  { %486 = vmatpush1.bf16.msra.mxu0 %v3169_v32  ;;  %v3206_v32 = vld [vmem:[%s4695_s1 + $0x1a0] ss:$8 sps:$4 sm:$0xff]  }
  0x38   :  { %487 = vmatprep.subr.bf16.mxu0 %v3170_v34  ;;  %v3209_v34 = vld [vmem:[%s4695_s1 + $0x1b0] ss:$8 sps:$4 sm:$0xff]  }
  0x39   :  { %937 = vmatpush1.bf16.msra.mxu1 %v3259_v23 }
  0x3a   :  { %938 = vmatprep.subr.bf16.mxu1 %v3260_v24 }
  0x3b   :  { %488 = vmatpush1.bf16.msra.mxu0 %v3172_v37  ;;  %v3217_v37 = vld [vmem:[%s4695_s1 + $0x1d4] ss:$8 sps:$4 sm:$0xff]  }
  0x3c   :  { %489 = vmatprep.subr.bf16.mxu0 %v3173_v38  ;;  %v3215_v38 = vld [vmem:[%s4695_s1 + $0x1d0] ss:$8 sps:$4 sm:$0xff]  }
  0x3d   :  { %939 = vmatpush1.bf16.msra.mxu1 %v3262_v27 }
  0x3e   :  { %940 = vmatprep.subr.bf16.mxu1 %v3263_v28  ;;  %v3276_v28 = vld [vmem:[%s4697_s3 + $0xf8] ss:$12 sps:$4 sm:$0xff]  }
  0x3f   :  { %490 = vmatpush1.bf16.msra.mxu0 %v3175_v41  ;;  %v3223_v41 = vld [vmem:[%s4695_s1 + $0x1f4] ss:$8 sps:$4 sm:$0xff]  }
  0x40   :  { %512 = vmatprep.subr.bf16.mxu0 %v3178_v43  ;;  %v41_v43 = vld [vmem:[%s4696_s0 + $0x10] sm:$0xff] }
  0x41   :  { %941 = vmatpush1.bf16.msra.mxu1 %v3265_v31  ;;  %v57_v47 = vpack.c.bf16 %v45_v44, %v41_v43  ;;  %v3286_v43 = vld [vmem:[%s4697_s3 + $0x170] ss:$12 sps:$4 sm:$0xff]  }
  0x42   :  { %492 = vmatmul.mubr.bf16.vlgmr.msra.gmra.mrb[0].mxu0 %v55_v49  ;;  %v49_v49 = vld [vmem:[%s4696_s0 + $0x50] sm:$0xff] }
  0x43   :  { %513 = vmatpush1.bf16.msra.mxu0 %v3176_v50  ;;  %501 = vmatprep.mubr.bf16.mxu0 %v60_v52  ;;  %v53_v50 = vld [vmem:[%s4696_s0 + $0x70] sm:$0xff] }
  0x44   :  { %514 = vmatprep.subr.bf16.mxu0 %v3181_v51  ;;  %v61_v51 = vpack.c.bf16 %v53_v50, %v49_v49  ;;  %v3266_v52 = vld [vmem:[%s4697_s3 + $0x154] ss:$12 sps:$4 sm:$0xff]   ;;  %v3287_v44 = vld [vmem:[%s4697_s3 + $0xb0] ss:$12 sps:$4 sm:$0xff]  }
  0x45   :  { %942 = vmatprep.subr.bf16.mxu1 %v3266_v52  ;;  %v3292_v49 = vld [vmem:[%s4698_s5 + $0x50] sm:$0xff]   ;;  %v3297_v52 = vld [vmem:[%s4698_s5 + $0x18] sm:$0xff]  }
  0x46   :  { %943 = vmatpush1.bf16.msra.mxu1 %v3268_v53  ;;  %v3294_v50 = vld [vmem:[%s4698_s5 + $0x10] sm:$0xff]   ;;  %v3298_v53 = vld [vmem:[%s4698_s5 + $0x60] sm:$0xff]  }
  0x47   :  { %515 = vmatpush1.bf16.msra.mxu0 %v3179_v54  ;;  %v3269_v54 = vld [vmem:[%s4697_s3 + $0x16c] ss:$12 sps:$4 sm:$0xff]  }
  0x48   :  { %516 = vmatprep.subr.bf16.mxu0 %v3184_v58  ;;  %944 = vmatprep.subr.bf16.mxu1 %v3269_v54  ;;  %v3296_v58 = vld [vmem:[%s4698_s5 + $0x88] sm:$0xff]   ;;  %v3299_v54 = vld [vmem:[%s4698_s5 + $0x90] sm:$0xff]  }
  0x4a   :  { %502 = vmatmul.mubr.bf16.gmra.mrb[4].mxu0 %v59_v1  ;;  %945 = vmatpush1.bf16.msra.mxu1 %v3271_v55  ;;  %v3300_v55 = vld [vmem:[%s4698_s5 + $0x20] sm:$0xff]  }
  0x4b   :  { %517 = vmatpush1.bf16.msra.mxu0 %v3182_v63  ;;  %544 = vmatprep.mubr.bf16.mxu0 %v58_v3  ;;  %v3865_v63 = vsub.s32 0, %v3856_v60 }
  0x4c   :  { %518 = vmatprep.subr.bf16.mxu0 %v3187_v0  ;;  %2937 = vmatprep.subr.bf16.mxu1 %v3272_v56  ;;  %v136_v0 = vrot.slane %v127_v62, %v3859_v61  ;;  %v3301_v56 = vld [vmem:[%s4698_s5 + $0x68] sm:$0xff]  }
  0x4d   :  { %v132_v1 = vrot.slane %v127_v62, %v3865_v63  ;;  %v3304_v62 = vld [vmem:[%s4698_s5 + $0x70] sm:$0xff]  }
  0x4f   :  { %519 = vmatpush1.bf16.msra.mxu0 %v3185_v5 }
  0x50   :  { %520 = vmatprep.subr.bf16.mxu0 %v3190_v6 }
  0x53   :  { %521 = vmatpush1.bf16.msra.mxu0 %v3188_v9 }
  0x54   :  { %522 = vmatprep.subr.bf16.mxu0 %v3193_v10 }
  0x57   :  { %523 = vmatpush1.bf16.msra.mxu0 %v3191_v13 }
  0x58   :  { %524 = vmatprep.subr.bf16.mxu0 %v3196_v14 }
  0x5b   :  { %525 = vmatpush1.bf16.msra.mxu0 %v3194_v17 }
  0x5c   :  { %526 = vmatprep.subr.bf16.mxu0 %v3199_v18 }
  0x5f   :  { %527 = vmatpush1.bf16.msra.mxu0 %v3197_v21 }
  0x60   :  { %528 = vmatprep.subr.bf16.mxu0 %v3202_v22 }
  0x63   :  { %529 = vmatpush1.bf16.msra.mxu0 %v3200_v25 }
  0x64   :  { %530 = vmatprep.subr.bf16.mxu0 %v3205_v26  ;;  %v3275_v26 = vld [vmem:[%s4697_s3 + $0x20] ss:$12 sps:$4 sm:$0xff]  }
  0x67   :  { %531 = vmatpush1.bf16.msra.mxu0 %v3203_v29 }
  0x68   :  { %532 = vmatprep.subr.bf16.mxu0 %v3208_v30 }
  0x6b   :  { %533 = vmatpush1.bf16.msra.mxu0 %v3206_v32 }
  0x6c   :  { %534 = vmatprep.subr.bf16.mxu0 %v3211_v33  ;;  %v3277_v33 = vld [vmem:[%s4697_s3 + $0x38] ss:$12 sps:$4 sm:$0xff]  }
  0x6f   :  { %535 = vmatpush1.bf16.msra.mxu0 %v3209_v34 }
  0x70   :  { %536 = vmatprep.subr.bf16.mxu0 %v3214_v35  ;;  %v3278_v35 = vld [vmem:[%s4697_s3 + $0x110] ss:$12 sps:$4 sm:$0xff]  }
  0x73   :  { %537 = vmatpush1.bf16.msra.mxu0 %v3212_v36  ;;  %v3279_v36 = vld [vmem:[%s4697_s3 + $0x50] ss:$12 sps:$4 sm:$0xff]  }
  0x74   :  { %538 = vmatprep.subr.bf16.mxu0 %v3217_v37  ;;  %v3280_v37 = vld [vmem:[%s4697_s3 + $0x128] ss:$12 sps:$4 sm:$0xff]  }
  0x77   :  { %539 = vmatpush1.bf16.msra.mxu0 %v3215_v38  ;;  %v3281_v38 = vld [vmem:[%s4697_s3 + $0x68] ss:$12 sps:$4 sm:$0xff]  }
  0x78   :  { %540 = vmatprep.subr.bf16.mxu0 %v3220_v39  ;;  %v3282_v39 = vld [vmem:[%s4697_s3 + $0x140] ss:$12 sps:$4 sm:$0xff]  }
  0x7b   :  { %541 = vmatpush1.bf16.msra.mxu0 %v3218_v40  ;;  %v3283_v40 = vld [vmem:[%s4697_s3 + $0x80] ss:$12 sps:$4 sm:$0xff]  }
  0x7c   :  { %542 = vmatprep.subr.bf16.mxu0 %v3223_v41  ;;  %v3284_v41 = vld [vmem:[%s4697_s3 + $0x158] ss:$12 sps:$4 sm:$0xff]  }
  0x7f   :  { %543 = vmatpush1.bf16.msra.mxu0 %v3221_v42  ;;  %v3285_v42 = vld [vmem:[%s4697_s3 + $0x98] ss:$12 sps:$4 sm:$0xff]  }
  0x80   :  { %3069 = vmatprep.subr.bf16.mxu0 %v3293_v57 }
  0x82   :  { %545 = vmatmul.mubr.bf16.vlgmr.msra.gmra.mrb[0].mxu0 %v57_v47  ;;  %v3290_v47 = vld [vmem:[%s4698_s5 + $0x48] sm:$0xff]  }
  0x83   :  { %554 = vmatprep.mubr.bf16.mxu0 %v62_v48  ;;  %3070 = vmatpush3.bf16.msra.mxu0 %v3293_v57  ;;  %v3291_v48 = vld [vmem:[%s4698_s5 + $0x8] sm:$0xff]   ;;  %v3302_v57 = vld [vmem:[%s4698_s5 + $0x98] sm:$0xff]  }
  0x84   :  { %3071 = vmatprep.subr.bf16.mxu0 %v3296_v58 }
  0x87   :  { %3072 = vmatpush3.bf16.msra.mxu0 %v3296_v58  ;;  %v3448_v58 = vmov 0.0  }
  0x88   :  { %3073 = vmatprep.subr.bf16.mxu0 %v3299_v54  ;;  %1028 = vst [vmem:[#allocation2] sm:$0xff] %v3448_v58  ;;  %1029 = vst [vmem:[#allocation2 + $0x8] sm:$0xff] %v3448_v58 }
  0x89   :  { %1030 = vst [vmem:[#allocation2 + $0x50] sm:$0xff] %v3448_v58  ;;  %1031 = vst [vmem:[#allocation2 + $0x58] sm:$0xff] %v3448_v58 }
  0x8a   :  { %555 = vmatmul.mubr.bf16.gmra.mrb[4].mxu0 %v61_v51  ;;  %v3295_v51 = vld [vmem:[%s4698_s5 + $0x58] sm:$0xff]  }
  0x8b   :  { %3074 = vmatpush3.bf16.msra.mxu0 %v3299_v54 }
  0x8c   :  { %3075 = vmatprep.subr.bf16.mxu0 %v3302_v57 }
  0x8f   :  { %3076 = vmatpush3.bf16.msra.mxu0 %v3302_v57 }
  0x90   :  { %v4073_v57 = vld [vmem:[#allocation2 + $0x58] sm:$0x3] }
 0x155   :  { %v546_v2 = vpop.f32.mrb[0].mxu0 }
 0x156   :  { %v548_v3 = vpop.f32.mrb[1].mxu0  ;;  %v3871_v6 = vadd.f32 %v546_v2, %v132_v1  ;;  %v3307_v2 = vld [vmem:[%s4698_s5 + $0x78] sm:$0xff]  }
 0x157   :  { %v3869_v4 = vadd.f32 %v548_v3, %v136_v0  ;;  %v550_v5 = vpop.f32.mrb[2].mxu0  ;;  %v3308_v3 = vld [vmem:[%s4698_s5 + $0xa8] sm:$0xff]  }
 0x158   :  { %v3873_v7 = vadd.f32 %v550_v5, %v132_v1  ;;  %v552_v8 = vpop.f32.mrb[3].mxu0  ;;  %v4714_v13 = vmax.f32 %v3871_v6, 0.0  ;;  %v3309_v5 = vld [vmem:[%s4698_s5 + $0x38] sm:$0xff]  }
 0x159   :  { %v3875_v9 = vadd.f32 %v552_v8, %v136_v0  ;;  %v4708_v11 = vmax.f32 %v3869_v4, 0.0  ;;  %v3310_v8 = vld [vmem:[%s4698_s5 + $0xb0] sm:$0xff]  }
 0x15a   :  { %v4713_v10 = vmax.f32 %v3873_v7, 0.0 }
 0x15b   :  { %v4707_v12 = vmax.f32 %v3875_v9, 0.0 }
 0x15c   :  { %v573_v17 = vpack.c.bf16 %v4713_v10, %v4714_v13 }
 0x15d   :  { %v556_v14 = vpop.f32.mrb[4].mxu0  ;;  %v574_v15 = vpack.c.bf16 %v4707_v12, %v4708_v11 }
 0x15e   :  { %v558_v18 = vpop.f32.mrb[5].mxu0  ;;  %v3897_v22 = vadd.f32 %v556_v14, %v132_v1  ;;  %v3311_v14 = vld [vmem:[%s4700_s7 + $0x40] sm:$0xff]  }
 0x15f   :  { %v3895_v20 = vadd.f32 %v558_v18, %v136_v0  ;;  %v560_v21 = vpop.f32.mrb[6].mxu0  ;;  %946 = vmatprep.mubr.bf16.mxu1 %v574_v15  ;;  %v4032_v18 = vld [vmem:[%s4701_s4] sm:$0x7] }
 0x160   :  { %v3899_v23 = vadd.f32 %v560_v21, %v132_v1  ;;  %v562_v24 = vpop.f32.mrb[7].mxu0  ;;  %947 = vmatmul.mubr.bf16.vlgmr.msra.gmra.mrb[0].mxu1 %v573_v17  ;;  %v4712_v31 = vmax.f32 %v3897_v22, 0.0  ;;  %v3306_v1 = vld [vmem:[%s4698_s5 + $0x30] sm:$0xff]   ;;  %v1045_v21 = vand.u32 15, %v3856_v60 }
 0x161   :  { %v3901_v25 = vadd.f32 %v562_v24, %v136_v0  ;;  %2938 = vmatpush3.bf16.msra.mxu1 %v3273_v16  ;;  %v4710_v29 = vmax.f32 %v3895_v20, 0.0  ;;  %v3305_v0 = vld [vmem:[%s4698_s5 + $0xa0] sm:$0xff]   ;;  %v4040_v24 = vrot.slane %v4032_v18, %v3865_v63 }
 0x162   :  { %v4711_v27 = vmax.f32 %v3899_v23, 0.0  ;;  %2939 = vmatprep.subr.bf16.mxu1 %v3274_v19  ;;  %3077 = vmatprep.subr.bf16.mxu0 %v3305_v0  ;;  %v3317_v16 = vld [vmem:[%s4700_s7 + $0xc0] sm:$0xff]   ;;  %v4035_v19 = vadd.s32 24, %v3856_v60 }
 0x163   :  { %v4709_v30 = vmax.f32 %v3901_v25, 0.0  ;;  %3078 = vmatpush3.bf16.msra.mxu0 %v3305_v0 }
 0x164   :  { %v575_v34 = vpack.c.bf16 %v4711_v27, %v4712_v31  ;;  %3079 = vmatprep.subr.bf16.mxu0 %v3308_v3 }
 0x165   :  { %v576_v32 = vpack.c.bf16 %v4709_v30, %v4710_v29  ;;  %2940 = vmatpush3.bf16.msra.mxu1 %v3275_v26  ;;  %v1049_v26 = vld [vmem:[#allocation2] sm:$0x80] }
 0x166   :  { %2941 = vmatprep.subr.bf16.mxu1 %v3276_v28 }
 0x167   :  { %956 = vmatprep.mubr.bf16.mxu1 %v576_v32  ;;  %3080 = vmatpush3.bf16.msra.mxu0 %v3308_v3 }
 0x168   :  { %957 = vmatmul.mubr.bf16.gmra.mrb[4].mxu1 %v575_v34  ;;  %3081 = vmatprep.subr.bf16.mxu0 %v3310_v8 }
 0x169   :  { %2942 = vmatpush3.bf16.msra.mxu1 %v3277_v33  ;;  %999 = vmatprep.mubr.bf16.mxu1 %v574_v15  ;;  %v3313_v15 = vld [vmem:[%s4698_s5 + $0xb8] sm:$0xff]   ;;  %v4048_v33 = vrot.slane %v4032_v18, %v3859_v61 }
 0x16a   :  { %2943 = vmatprep.subr.bf16.mxu1 %v3278_v35  ;;  %v1050_v35 = vld [vmem:[#allocation2 + $0x8] sm:$0x80] }
 0x16b   :  { %3082 = vmatpush3.bf16.msra.mxu0 %v3310_v8 }
 0x16c   :  { %3083 = vmatprep.subr.bf16.mxu0 %v3313_v15 }
 0x16d   :  { %2944 = vmatpush3.bf16.msra.mxu1 %v3279_v36  ;;  %v1059_v36 = vadd.s32 4294967295, %v1045_v21 }
 0x16e   :  { %2945 = vmatprep.subr.bf16.mxu1 %v3280_v37  ;;  %v1207_v37 = vld [vmem:[#allocation2 + $0x8] sm:$0xc0] }
 0x16f   :  { %3084 = vmatpush3.bf16.msra.mxu0 %v3313_v15  ;;  %vm1063_vm2 = vcmp.ge.s32.totalorder %v1059_v36, 0  ;;  %v1289_v15 = vrot.slane %v4073_v57, 2  ;;  %v3314_v36 = vld [vmem:[%s4700_s7 + $0x48] sm:$0xff]  }
 0x170   :  { %3031 = vmatprep.subr.bf16.mxu0 %v3317_v16  ;;  %vm4102_vm7 = vmpackc.low %vm3449_vm6, %vm1063_vm2  ;;  %v3375_v57 = vld [vmem:[%s4702_s9 + $0x6c] ss:$16 sps:$4 sm:$0xff]  }
 0x171   :  { %2946 = vmatpush3.bf16.msra.mxu1 %v3281_v38 }
 0x172   :  { %2947 = vmatprep.subr.bf16.mxu1 %v3282_v39  ;;  %v1094_v39 = vrot.slane %v1049_v26, 7 }
 0x175   :  { %2948 = vmatpush3.bf16.msra.mxu1 %v3283_v40 }
 0x176   :  { %2949 = vmatprep.subr.bf16.mxu1 %v3284_v41 }
 0x179   :  { %2950 = vmatpush3.bf16.msra.mxu1 %v3285_v42 }
 0x17a   :  { %2951 = vmatprep.subr.bf16.mxu1 %v3286_v43 }
 0x17d   :  { %2952 = vmatpush3.bf16.msra.mxu1 %v3287_v44  ;;  %v4059_v44 = vld [vmem:[#allocation2 + $0x50] sm:$0x1] }
 0x17e   :  { %2965 = vmatprep.subr.bf16.mxu1 %v3288_v45  ;;  %v1097_v45 = vrot.slane %v1050_v35, 7 }
 0x180   :  { %1000 = vmatmul.mubr.bf16.vlgmr.msra.gmra.mrb[8].mxu1 %v573_v17  ;;  %v4027_v17 = vadd.s32 8, %v3856_v60 }
 0x181   :  { %1007 = vmatprep.mubr.bf16.mxu1 %v576_v32  ;;  %2966 = vmatpush3.bf16.msra.mxu1 %v3289_v46  ;;  %v4044_v32 = vadd.s32 16, %v3856_v60 }
 0x182   :  { %2967 = vmatprep.subr.bf16.mxu1 %v3290_v47  ;;  %v1046_v28 = vand.u32 15, %v4027_v17  ;;  %v3346_v17 = vld [vmem:[%s4700_s7 + $0x110] sm:$0xff]  }
 0x183   :  { %v1047_v43 = vand.u32 15, %v4044_v32 }
 0x184   :  { %v4056_v42 = vadd.s32 1, %v1046_v28 }
 0x185   :  { %2968 = vmatpush3.bf16.msra.mxu1 %v3291_v48 }
 0x186   :  { %2969 = vmatprep.subr.bf16.mxu1 %v3292_v49  ;;  %v1236_v49 = vrot.slane %v1207_v37, 6  ;;  %vm1147_vm4 = vcmp.lt.s32.totalorder %v4056_v42, 16 }
 0x187   :  { %vm4161_vm9 = vmpackc.low %vm1147_vm4, %vm3449_vm6 }
 0x188   :  { %1008 = vmatmul.mubr.bf16.gmra.mrb[12].mxu1 %v575_v34  ;;  %v4715_v34 = vand.u32 15, %v4035_v19 }
 0x189   :  { %2970 = vmatpush3.bf16.msra.mxu1 %v3294_v50 }
 0x18a   :  { %2971 = vmatprep.subr.bf16.mxu1 %v3295_v51  ;;  %v4064_v48 = vadd.s32 1, %v4715_v34 }
 0x18c   :  { %vm1149_vm5 = vcmp.lt.s32.totalorder %v4064_v48, 16 }
 0x18d   :  { %2972 = vmatpush3.bf16.msra.mxu1 %v3297_v52  ;;  %vm4181_vm10 = vmpackc.low %vm1149_vm5, %vm3449_vm6  ;;  %vm2110_vm5 = vcmask 523264  }
 0x18e   :  { %2973 = vmatprep.subr.bf16.mxu1 %v3298_v53  ;;  %v4067_v53 = vld [vmem:[#allocation2 + $0x58] sm:$0x1] }
 0x18f   :  { %v1189_v3 = vrot.slane %v4067_v53, 1 }
 0x191   :  { %2974 = vmatpush3.bf16.msra.mxu1 %v3300_v55 }
 0x192   :  { %2975 = vmatprep.subr.bf16.mxu1 %v3301_v56  ;;  %v1187_v56 = vrot.slane %v4059_v44, 1 }
 0x195   :  { %2976 = vmatpush3.bf16.msra.mxu1 %v3303_v59 }
 0x196   :  { %2977 = vmatprep.subr.bf16.mxu1 %v3304_v62  ;;  %v4080_v62 = vadd.s32 4294967295, %v1047_v43 }
 0x198   :  { %vm1065_vm11 = vcmp.ge.s32.totalorder %v4080_v62, 0  ;;  %v3328_v62 = vld [vmem:[%s4700_s7 + $0x68] sm:$0xff]  }
 0x199   :  { %2978 = vmatpush3.bf16.msra.mxu1 %v3306_v1  ;;  %vm4267_vm12 = vmpackc.low %vm3449_vm6, %vm1065_vm11 }
 0x19a   :  { %2979 = vmatprep.subr.bf16.mxu1 %v3307_v2 }
 0x19d   :  { %2980 = vmatpush3.bf16.msra.mxu1 %v3309_v5 }
 0x19e   :  { %3003 = vmatprep.subr.bf16.mxu1 %v3311_v14 }
 0x233   :  { %v948_v38 = vpop.f32.mrb[0].mxu1 }
 0x234   :  { %v949_v40 = vadd.f32 %v948_v38, %v4040_v24  ;;  %v950_v41 = vpop.f32.mrb[1].mxu1 }
 0x235   :  { %v951_v46 = vadd.f32 %v950_v41, %v4048_v33  ;;  %v952_v47 = vpop.f32.mrb[2].mxu1 }
 0x236   :  { %v1016_v50 = vmax.f32 %v949_v40, 0.0  ;;  %v953_v51 = vadd.f32 %v952_v47, %v4040_v24  ;;  %v954_v52 = vpop.f32.mrb[3].mxu1  ;;  %v3312_v47 = vld [vmem:[%s4700_s7] sm:$0xff]  }
 0x237   :  { %v4069_v54 = vmax.f32 %v951_v46, 0.0  ;;  %v955_v55 = vadd.f32 %v954_v52, %v4048_v33  ;;  %v3333_v46 = vld [vmem:[%s4700_s7 + $0xe0] sm:$0xff]  }
 0x238   :  { %1032 = vst [vmem:[#allocation2 + $0x10] sm:$0xff] %v1016_v50  ;;  %v4075_v58 = vmax.f32 %v953_v51, 0.0  ;;  %v1095_v59 = vrot.slane %v1016_v50, 7 }
 0x239   :  { %1033 = vst [vmem:[#allocation2 + $0x18] sm:$0xff] %v4069_v54  ;;  %v4083_v0 = vmax.f32 %v955_v55, 0.0  ;;  %v1098_v1 = vrot.slane %v4069_v54, 7  ;;  %v1237_v2 = vrot.slane %v4069_v54, 6 }
 0x23a   :  { %v1300_v5 = vpack.c.bf16 %v4075_v58, %v1016_v50  ;;  %v1096_v8 = vsel %vm1093_vm0, %v1094_v39, %v1095_v59  ;;  %v1100_v14 = vrot.slane %v4075_v58, 7  ;;  %v1174_v35 = vrot.slane %v4075_v58, 1 }
 0x23b   :  { %v1608_v16 = vpack.c.bf16 %v4083_v0, %v4069_v54  ;;  %v958_v26 = vpop.f32.mrb[4].mxu1  ;;  %v1102_v37 = vrot.slane %v4083_v0, 7  ;;  %v1239_v38 = vrot.slane %v4083_v0, 6  ;;  %v4110_v50 = vsel %vm1093_vm0, %v1097_v45, %v1098_v1  ;;  %v3349_v54 = vld [vmem:[%s4700_s7 + $0x128] sm:$0xff]  }
 0x23c   :  { %v959_v40 = vadd.f32 %v958_v26, %v4040_v24  ;;  %v960_v41 = vpop.f32.mrb[5].mxu1  ;;  %1536 = vmatprep.mubr.bf16.mxu1 %v1300_v5  ;;  %v1101_v39 = vsel %vm1093_vm0, %v1095_v59, %v1100_v14  ;;  %v4113_v51 = vsel %vm1235_vm1, %v1236_v49, %v1237_v2 }
 0x23d   :  { %v961_v52 = vadd.f32 %v960_v41, %v4048_v33  ;;  %v962_v55 = vpop.f32.mrb[6].mxu1  ;;  %v2797_v58 = vpack.c.bf16 %v1101_v39, %v1096_v8  ;;  %v4122_v59 = vsel %vm1093_vm0, %v1098_v1, %v1102_v37  ;;  %v4127_v45 = vsel %vm1235_vm1, %v1237_v2, %v1239_v38  ;;  %v3315_v2 = vld [vmem:[%s4700_s7 + $0x8] sm:$0xff]  }
 0x23e   :  { %v4129_v49 = vmax.f32 %v959_v40, 0.0  ;;  %v963_v5 = vadd.f32 %v962_v55, %v4040_v24  ;;  %v964_v8 = vpop.f32.mrb[7].mxu1  ;;  %v2850_v26 = vpack.c.bf16 %v4122_v59, %v4110_v50  ;;  %v2853_v41 = vpack.c.bf16 %v4127_v45, %v4113_v51  ;;  %v3347_v51 = vld [vmem:[%s4700_s7 + $0x118] sm:$0xff]   ;;  %v3348_v45 = vld [vmem:[%s4700_s7 + $0x120] sm:$0xff]  }
 0x23f   :  { %v4136_v39 = vmax.f32 %v961_v52, 0.0  ;;  %v965_v1 = vadd.f32 %v964_v8, %v4048_v33  ;;  %2798 = vmatmul.mubr.msk.bf16.vlgmr.msra.gmra.mrb[16].mxu1 %vm4102_vm7, %v2797_v58  ;;  %v1128_v40 = vld [vmem:[#allocation2 + $0x10] sm:$0xfe]  ;;  %v1177_v24 = vrot.slane %v4083_v0, 1  ;;  %v1283_v55 = vrot.slane %v4083_v0, 2 }
 0x240   :  { %v1025_v12 = vmax.f32 %v963_v5, 0.0  ;;  %3004 = vmatpush3.bf16.msra.mxu1 %v3312_v47  ;;  %v1173_v11 = vrot.slane %v1128_v40, 1  ;;  %v1179_v52 = vrot.slane %v4129_v49, 1  ;;  %v1104_v30 = vrot.slane %v4129_v49, 7  ;;  %v1129_v33 = vld [vmem:[#allocation2 + $0x18] sm:$0xfe] }
 0x241   :  { %v4148_v8 = vmax.f32 %v965_v1, 0.0  ;;  %3005 = vmatprep.subr.bf16.mxu1 %v3314_v36  ;;  %v3316_v58 = vld [vmem:[%s4700_s7 + $0x50] sm:$0xff]   ;;  %v1176_v29 = vrot.slane %v1129_v33, 1  ;;  %v1181_v27 = vrot.slane %v4136_v39, 1  ;;  %v1106_v31 = vrot.slane %v4136_v39, 7 }
 0x242   :  { %1038 = vst [vmem:[#allocation2 + $0x40] sm:$0xff] %v1025_v12  ;;  %v1303_v47 = vpack.c.bf16 %v1025_v12, %v4129_v49  ;;  %v1175_v5 = vsel %vm1172_vm3, %v1173_v11, %v1174_v35  ;;  %v1180_v40 = vsel %vm1172_vm3, %v1174_v35, %v1179_v52  ;;  %v1183_v10 = vrot.slane %v1025_v12, 1  ;;  %v1253_v35 = vld [vmem:[#allocation2 + $0x18] sm:$0xfc]  ;;  %v3350_v0 = vld [vmem:[%s4700_s7 + $0x130] sm:$0xff]  }
 0x243   :  { %1039 = vst [vmem:[#allocation2 + $0x48] sm:$0xff] %v4148_v8  ;;  %v1613_v1 = vpack.c.bf16 %v4148_v8, %v4136_v39  ;;  %v2803_v33 = vpack.c.bf16 %v1180_v40, %v1175_v5  ;;  %v4171_v11 = vsel %vm1093_vm0, %v1100_v14, %v1104_v30  ;;  %v1178_v12 = vsel %vm1172_vm3, %v1176_v29, %v1177_v24  ;;  %v3318_v29 = vld [vmem:[%s4700_s7 + $0x10] sm:$0xff]   ;;  %v3319_v14 = vld [vmem:[%s4700_s7 + $0x80] sm:$0xff]  }
 0x244   :  { %1544 = vmatprep.mubr.bf16.mxu1 %v1303_v47  ;;  %3006 = vmatpush3.bf16.msra.mxu1 %v3315_v2  ;;  %v1184_v42 = vsel %vm1172_vm3, %v1179_v52, %v1183_v10  ;;  %v1188_v13 = vsel %vm1172_vm3, %v1183_v10, %v1187_v56  ;;  %v1182_v2 = vsel %vm1172_vm3, %v1177_v24, %v1181_v27  ;;  %v1241_v44 = vrot.slane %v4136_v39, 6  ;;  %v3320_v56 = vld [vmem:[%s4700_s7 + $0x58] sm:$0xff]   ;;  %v3321_v47 = vld [vmem:[%s4700_s7 + $0xc8] sm:$0xff]  }
 0x245   :  { %3085 = vmatprep.mubr.msk.bf16.mxu0 %vm4161_vm9, %v2803_v33  ;;  %3007 = vmatprep.subr.bf16.mxu1 %v3316_v58  ;;  %v2806_v10 = vpack.c.bf16 %v1188_v13, %v1184_v42  ;;  %v2862_v48 = vpack.c.bf16 %v1182_v2, %v1178_v12  ;;  %v4203_v52 = vsel %vm1093_vm0, %v1102_v37, %v1106_v31  ;;  %v1185_v24 = vrot.slane %v4148_v8, 1 }
 0x246   :  { %v4212_v13 = vsel %vm1235_vm1, %v1239_v38, %v1241_v44  ;;  %v1287_v58 = vrot.slane %v4148_v8, 2  ;;  %v1282_v40 = vrot.slane %v1253_v35, 2  ;;  %v1285_v33 = vrot.slane %v4136_v39, 2  ;;  %v3322_v38 = vld [vmem:[%s4700_s7 + $0x18] sm:$0xff]   ;;  %v3323_v35 = vld [vmem:[%s4700_s7 + $0x88] sm:$0xff]  }
 0x247   :  { %3086 = vmatmul.mubr.msk.bf16.vlgmr.msra.gmra.mrb[8].mxu0 %vm4181_vm10, %v2806_v10  ;;  %v4219_v37 = vsel %vm1172_vm3, %v1181_v27, %v1185_v24  ;;  %v4224_v12 = vsel %vm1172_vm3, %v1185_v24, %v1189_v3  ;;  %v3354_v39 = vld [vmem:[%s4702_s9 + $0x4] ss:$16 sps:$4 sm:$0xff]   ;;  %v3352_v8 = vld [vmem:[%s4702_s9] ss:$16 sps:$4 sm:$0xff]  }
 0x248   :  { %3008 = vmatpush3.bf16.msra.mxu1 %v3318_v29  ;;  %3032 = vmatpush3.bf16.msra.mxu0 %v3319_v14  ;;  %v2865_v42 = vpack.c.bf16 %v4224_v12, %v4219_v37  ;;  %v4235_v27 = vsel %vm1281_vm8, %v1282_v40, %v1283_v55  ;;  %v4238_v53 = vsel %vm1281_vm8, %v1283_v55, %v1285_v33  ;;  %v3324_v29 = vld [vmem:[%s4700_s7 + $0x60] sm:$0xff]   ;;  %v3325_v14 = vld [vmem:[%s4700_s7 + $0xd0] sm:$0xff]   ;;  %v3361_v12 = vld [vmem:[%s4702_s9 + $0x28] ss:$16 sps:$4 sm:$0xff]  }
 0x249   :  { %v1057_v3 = vld [vmem:[#allocation2 + $0x40] sm:$0x7f]  ;;  %2863 = vmatprep.mubr.msk.bf16.mxu0 %vm4161_vm9, %v2862_v48  ;;  %3009 = vmatprep.subr.bf16.mxu1 %v3320_v56  ;;  %v4250_v2 = vsel %vm1281_vm8, %v1285_v33, %v1287_v58  ;;  %v4255_v55 = vsel %vm1281_vm8, %v1287_v58, %v1289_v15  ;;  %v2868_v36 = vpack.c.bf16 %v4238_v53, %v4235_v27  ;;  %v3369_v27 = vld [vmem:[%s4702_s9 + $0x4c] ss:$16 sps:$4 sm:$0xff]  }
 0x24a   :  { %v1108_v10 = vrot.slane %v1057_v3, 7  ;;  %3033 = vmatprep.subr.bf16.mxu0 %v3321_v47  ;;  %v1058_v48 = vld [vmem:[#allocation2 + $0x48] sm:$0x7f]  ;;  %v2871_v24 = vpack.c.bf16 %v4255_v55, %v4250_v2  ;;  %v3326_v15 = vld [vmem:[%s4700_s7 + $0x20] sm:$0xff]   ;;  %v653_v3 = vsub.s32 2, %v3856_v60 }
 0x24b   :  { %v1208_v56 = vld [vmem:[#allocation2 + $0x48] sm:$0x3f]  ;;  %v1110_v40 = vrot.slane %v1058_v48, 7  ;;  %v3335_v48 = vld [vmem:[%s4700_s7 + $0xa0] sm:$0xff]  }
 0x24c   :  { %v1243_v34 = vrot.slane %v1208_v56, 6  ;;  %v1109_v33 = vsel %vm1093_vm0, %v1104_v30, %v1108_v10  ;;  %3010 = vmatpush3.bf16.msra.mxu1 %v3322_v38  ;;  %3034 = vmatpush3.bf16.msra.mxu0 %v3323_v35  ;;  %v3327_v30 = vld [vmem:[%s4700_s7 + $0x90] sm:$0xff]   ;;  %v654_v59 = vrot.slane %v4032_v18, %v653_v3  ;;  %v3336_v56 = vld [vmem:[%s4700_s7 + $0x78] sm:$0xff]   ;;  %v1209_v18 = vadd.s32 4294967294, %v1045_v21  ;;  %v3339_v21 = vld [vmem:[%s4700_s7 + $0xa8] sm:$0xff]  }
 0x24d   :  { %v2800_v47 = vpack.c.bf16 %v1109_v33, %v4171_v11  ;;  %3011 = vmatprep.subr.bf16.mxu1 %v3324_v29  ;;  %3035 = vmatprep.subr.bf16.mxu0 %v3325_v14  ;;  %v4284_v49 = vsel %vm1093_vm0, %v1106_v31, %v1110_v40  ;;  %v3329_v11 = vld [vmem:[%s4700_s7 + $0xd8] sm:$0xff]   ;;  %v3330_v31 = vld [vmem:[%s4700_s7 + $0x28] sm:$0xff]   ;;  %v3334_v29 = vld [vmem:[%s4700_s7 + $0x30] sm:$0xff]  }
 0x24e   :  { %v4287_v58 = vsel %vm1235_vm1, %v1241_v44, %v1243_v34  ;;  %v2856_v38 = vpack.c.bf16 %v4284_v49, %v4203_v52  ;;  %v3331_v34 = vld [vmem:[%s4700_s7 + $0x98] sm:$0xff]   ;;  %v3332_v44 = vld [vmem:[%s4700_s7 + $0x70] sm:$0xff]   ;;  %v3337_v33 = vld [vmem:[%s4700_s7 + $0xe8] sm:$0xff]   ;;  %vm1213_vm13 = vcmp.ge.s32.totalorder %v1209_v18, 0 }
 0x24f   :  { %v2859_v35 = vpack.c.bf16 %v4287_v58, %v4212_v13  ;;  %2801 = vmatmul.mubr.msk.bf16.gmra.mrb[20].mxu1 %vm4267_vm12, %v2800_v47  ;;  %vm2852_vm14 = vmpackc.low %vm3449_vm6, %vm1213_vm13  ;;  %v3343_v18 = vld [vmem:[%s4700_s7 + $0xf8] sm:$0xff]   ;;  %v3360_v52 = vld [vmem:[%s4702_s9 + $0x24] ss:$16 sps:$4 sm:$0xff]  }
 0x250   :  { %2851 = vmatprep.mubr.msk.bf16.mxu1 %vm4102_vm7, %v2850_v26  ;;  %3012 = vmatpush3.bf16.msra.mxu1 %v3326_v15  ;;  %v3363_v13 = vld [vmem:[%s4702_s9 + $0x2c] ss:$16 sps:$4 sm:$0xff]   ;;  %v3358_v37 = vld [vmem:[%s4702_s9 + $0x20] ss:$16 sps:$4 sm:$0xff]   ;;  %v3367_v2 = vld [vmem:[%s4702_s9 + $0x48] ss:$16 sps:$4 sm:$0xff]  }
 0x251   :  { %3036 = vmatpush3.bf16.msra.mxu0 %v3327_v30  ;;  %3013 = vmatprep.subr.bf16.mxu1 %v3328_v62  ;;  %v3338_v30 = vld [vmem:[%s4700_s7 + $0x38] sm:$0xff]   ;;  %v3364_v53 = vld [vmem:[%s4702_s9 + $0x40] ss:$16 sps:$4 sm:$0xff]   ;;  %v3372_v55 = vld [vmem:[%s4702_s9 + $0x64] ss:$16 sps:$4 sm:$0xff]  }
 0x252   :  { %3037 = vmatprep.subr.bf16.mxu0 %v3329_v11  ;;  %v3378_v49 = vld [vmem:[%s4702_s9 + $0x84] ss:$16 sps:$4 sm:$0xff]   ;;  %v3376_v58 = vld [vmem:[%s4702_s9 + $0x80] ss:$16 sps:$4 sm:$0xff]  }
 0x253   :  { %v2953_v50 = vpop.f32.mrb[8].mxu1 }
 0x254   :  { %v2954_v26 = vpop.f32.mrb[9].mxu1  ;;  %3014 = vmatpush3.bf16.msra.mxu1 %v3330_v31  ;;  %v3341_v31 = vld [vmem:[%s4700_s7 + $0x100] sm:$0xff]  }
 0x255   :  { %v2955_v14 = vadd.f32 %v2954_v26, %v2953_v50  ;;  %v2956_v10 = vpop.f32.mrb[10].mxu1  ;;  %3038 = vmatpush3.bf16.msra.mxu0 %v3331_v34  ;;  %3015 = vmatprep.subr.bf16.mxu1 %v3332_v44  ;;  %v3340_v34 = vld [vmem:[%s4700_s7 + $0xf0] sm:$0xff]  }
 0x256   :  { %v2957_v40 = vpop.f32.mrb[11].mxu1  ;;  %3039 = vmatprep.subr.bf16.mxu0 %v3333_v46 }
 0x257   :  { %v2958_v15 = vadd.f32 %v2957_v40, %v2956_v10  ;;  %v1002_v47 = vadd.f32 %v2955_v14, %v654_v59  ;;  %v3342_v14 = vld [vmem:[%s4700_s7 + $0xb0] sm:$0xff]   ;;  %v3344_v10 = vld [vmem:[%s4700_s7 + $0x108] sm:$0xff]  }
 0x258   :  { %3016 = vmatpush3.bf16.msra.mxu1 %v3334_v29 }
 0x259   :  { %v1005_v62 = vadd.f32 %v2958_v15, %v654_v59  ;;  %v1018_v11 = vmax.f32 %v1002_v47, 0.0  ;;  %3040 = vmatpush3.bf16.msra.mxu0 %v3335_v48  ;;  %3017 = vmatprep.subr.bf16.mxu1 %v3336_v56  ;;  %v1211_v48 = vadd.s32 4294967294, %v1047_v43  ;;  %v1256_v15 = vadd.s32 2, %v1046_v28  ;;  %v3345_v47 = vld [vmem:[%s4700_s7 + $0xb8] sm:$0xff]  }
 0x25a   :  { %3041 = vmatprep.subr.bf16.mxu0 %v3337_v33 }
 0x25b   :  { %v2959_v44 = vpop.f32.mrb[12].mxu1  ;;  %2098 = vrot.lane.b32.xlu0 %v1018_v11, %s3450_s12  ;;  %v1021_v50 = vmax.f32 %v1005_v62, 0.0  ;;  %vm1215_vm15 = vcmp.ge.s32.totalorder %v1211_v48, 0  ;;  %vm1264_vm0 = vcmp.lt.s32.totalorder %v1256_v15, 16  ;;  %v3385_v62 = vld [vmem:[%s4702_s9 + $0xa8] ss:$16 sps:$4 sm:$0xff]  }
 0x25c   :  { %v2960_v46 = vpop.f32.mrb[13].mxu1  ;;  %3018 = vmatpush3.bf16.msra.mxu1 %v3338_v30  ;;  %vm2858_vm1 = vmpackc.low %vm3449_vm6, %vm1215_vm15  ;;  %v3384_v30 = vld [vmem:[%s4702_s9 + $0xa4] ss:$16 sps:$4 sm:$0xff]   ;;  %v3387_v11 = vld [vmem:[%s4702_s9 + $0xac] ss:$16 sps:$4 sm:$0xff]  }
 0x25d   :  { %v2961_v26 = vadd.f32 %v2960_v46, %v2959_v44  ;;  %v2962_v29 = vpop.f32.mrb[14].mxu1  ;;  %3042 = vmatpush3.bf16.msra.mxu0 %v3339_v21  ;;  %3089 = vmatprep.subr.bf16.mxu1 %v3341_v31  ;;  %vm2867_vm2 = vmpackc.low %vm1264_vm0, %vm3449_vm6  ;;  %v3388_v21 = vld [vmem:[%s4702_s9 + $0xc0] ss:$16 sps:$4 sm:$0xff]   ;;  %v3393_v44 = vld [vmem:[%s4702_s9 + $0xcc] ss:$16 sps:$4 sm:$0xff]  }
 0x25e   :  { %v2963_v56 = vpop.f32.mrb[15].mxu1  ;;  %3043 = vmatprep.subr.bf16.mxu0 %v3340_v34  ;;  %v3391_v34 = vld [vmem:[%s4702_s9 + $0xc8] ss:$16 sps:$4 sm:$0xff]   ;;  %v3394_v46 = vld [vmem:[%s4702_s9 + $0xe0] ss:$16 sps:$4 sm:$0xff]  }
 0x25f   :  { %v2964_v40 = vadd.f32 %v2963_v56, %v2962_v29  ;;  %2100 = vrot.lane.b32.xlu0 %v1021_v50, %s3450_s12  ;;  %v1010_v33 = vadd.f32 %v2961_v26, %v654_v59  ;;  %2854 = vmatmul.mubr.msk.bf16.vlgmr.msra.gmra.mrb[24].mxu1 %vm2852_vm14, %v2853_v41  ;;  %v4724_v41 = vand.u32 15, %v4035_v19  ;;  %v3355_v19 = vld [vmem:[%s4702_s9 + $0x8] ss:$16 sps:$4 sm:$0xff]   ;;  %v3396_v50 = vld [vmem:[%s4702_s9 + $0xe4] ss:$16 sps:$4 sm:$0xff]  }
 0x260   :  { %2857 = vmatprep.mubr.msk.bf16.mxu1 %vm4267_vm12, %v2856_v38  ;;  %3090 = vmatpush3.bf16.msra.mxu1 %v3341_v31  ;;  %v3381_v38 = vld [vmem:[%s4702_s9 + $0x8c] ss:$16 sps:$4 sm:$0xff]   ;;  %v3390_v31 = vld [vmem:[%s4702_s9 + $0xc4] ss:$16 sps:$4 sm:$0xff]   ;;  %v3397_v26 = vld [vmem:[%s4702_s9 + $0xe8] ss:$16 sps:$4 sm:$0xff]  }
 0x261   :  { %v1013_v32 = vadd.f32 %v2964_v40, %v654_v59  ;;  %v1024_v43 = vmax.f32 %v1010_v33, 0.0  ;;  %3044 = vmatpush3.bf16.msra.mxu0 %v3342_v14  ;;  %3091 = vmatprep.subr.bf16.mxu1 %v3344_v10  ;;  %v1258_v5 = vadd.s32 2, %v4724_v41  ;;  %v3382_v59 = vld [vmem:[%s4702_s9 + $0xa0] ss:$16 sps:$4 sm:$0xff]   ;;  %v3399_v29 = vld [vmem:[%s4702_s9 + $0xec] ss:$16 sps:$4 sm:$0xff]  }
 0x262   :  { %3045 = vmatprep.subr.bf16.mxu0 %v3343_v18  ;;  %v3400_v14 = vld [vmem:[%s4702_s9 + $0x100] ss:$16 sps:$4 sm:$0xff]   ;;  %v3405_v48 = vld [vmem:[%s4702_s9 + $0x10c] ss:$16 sps:$4 sm:$0xff]   ;;  %v3403_v56 = vld [vmem:[%s4702_s9 + $0x108] ss:$16 sps:$4 sm:$0xff]  }
 0x263   :  { %2102 = vrot.lane.b32.xlu1 %v1024_v43, %s3450_s12  ;;  %v1027_v28 = vmax.f32 %v1013_v32, 0.0  ;;  %vm1266_vm3 = vcmp.lt.s32.totalorder %v1258_v5, 16  ;;  %v3406_v18 = vld [vmem:[%s4702_s9 + $0x120] ss:$16 sps:$4 sm:$0xff]   ;;  %v3408_v40 = vld [vmem:[%s4702_s9 + $0x124] ss:$16 sps:$4 sm:$0xff]  }
 0x264   :  { %3092 = vmatpush3.bf16.msra.mxu1 %v3344_v10  ;;  %vm2870_vm4 = vmpackc.low %vm1266_vm3, %vm3449_vm6  ;;  %v3402_v10 = vld [vmem:[%s4702_s9 + $0x104] ss:$16 sps:$4 sm:$0xff]   ;;  %v3411_v33 = vld [vmem:[%s4702_s9 + $0x12c] ss:$16 sps:$4 sm:$0xff]  }
 0x265   :  { %3046 = vmatpush3.bf16.msra.mxu0 %v3345_v47  ;;  %3093 = vmatprep.subr.bf16.mxu1 %v3346_v17  ;;  %v3409_v15 = vld [vmem:[%s4702_s9 + $0x128] ss:$16 sps:$4 sm:$0xff]   ;;  %v3414_v32 = vld [vmem:[%s4702_s9 + $0x144] ss:$16 sps:$4 sm:$0xff]   ;;  %v3417_v43 = vld [vmem:[%s4702_s9 + $0x14c] ss:$16 sps:$4 sm:$0xff]  }
 0x266   :  { %2533 = vmatprep.subr.bf16.mxu0 %v3354_v39  ;;  %v3412_v47 = vld [vmem:[%s4702_s9 + $0x140] ss:$16 sps:$4 sm:$0xff]   ;;  %v3427_v5 = vld [vmem:[%s4702_s9 + $0x188] ss:$16 sps:$4 sm:$0xff]   ;;  %v3432_v39 = vld [vmem:[%s4702_s9 + $0x1a4] ss:$16 sps:$4 sm:$0xff]  }
 0x267   :  { %2104 = vrot.lane.b32.xlu1 %v1027_v28, %s3450_s12  ;;  %2860 = vmatmul.mubr.msk.bf16.gmra.mrb[28].mxu1 %vm2858_vm1, %v2859_v35  ;;  %v3379_v35 = vld [vmem:[%s4702_s9 + $0x88] ss:$16 sps:$4 sm:$0xff]   ;;  %v3424_v41 = vld [vmem:[%s4702_s9 + $0x180] ss:$16 sps:$4 sm:$0xff]  }
 0x268   :  { %2025 = vmatmul.mubr.bf16.vlgmr.msra.gmra.mrb[12].mxu0 %v1608_v16  ;;  %3094 = vmatpush3.bf16.msra.mxu1 %v3346_v17  ;;  %v3351_v16 = vld [vmem:[%s4700_s7 + $0x138] sm:$0xff]   ;;  %v3420_v17 = vld [vmem:[%s4702_s9 + $0x164] ss:$16 sps:$4 sm:$0xff]  }
 0x269   :  { %2866 = vmatprep.mubr.msk.bf16.mxu0 %vm4181_vm10, %v2865_v42  ;;  %3105 = vmatprep.mubr.msk.bf16.mxu1 %vm2867_vm2, %v2868_v36  ;;  %v3366_v42 = vld [vmem:[%s4702_s9 + $0x44] ss:$16 sps:$4 sm:$0xff]   ;;  %v3370_v36 = vld [vmem:[%s4702_s9 + $0x60] ss:$16 sps:$4 sm:$0xff]   ;;  %v3415_v28 = vld [vmem:[%s4702_s9 + $0x148] ss:$16 sps:$4 sm:$0xff]  }
 0x26a   :  { %3095 = vmatprep.subr.bf16.mxu1 %v3347_v51  ;;  %2534 = vmatpush1.bf16.msra.mxu0 %v3352_v8  ;;  %v3435_v8 = vld [vmem:[%s4702_s9 + $0x1ac] ss:$16 sps:$4 sm:$0xff]  }
 0x26b   :  { %2535 = vmatprep.subr.bf16.mxu0 %v3360_v52  ;;  %v3436_v52 = vld [vmem:[%s4702_s9 + $0x1c0] ss:$16 sps:$4 sm:$0xff]  }
 0x26c   :  { %3096 = vmatpush3.bf16.msra.mxu1 %v3347_v51  ;;  %v3423_v51 = vld [vmem:[%s4702_s9 + $0x16c] ss:$16 sps:$4 sm:$0xff]  }
 0x26d   :  { %3097 = vmatprep.subr.bf16.mxu1 %v3348_v45 }
 0x26e   :  { %2536 = vmatpush1.bf16.msra.mxu0 %v3358_v37  ;;  %v3439_v37 = vld [vmem:[%s4702_s9 + $0x1c8] ss:$16 sps:$4 sm:$0xff]  }
 0x26f   :  { %2537 = vmatprep.subr.bf16.mxu0 %v3366_v42  ;;  %v3444_v42 = vld [vmem:[%s4702_s9 + $0x1e4] ss:$16 sps:$4 sm:$0xff]  }
 0x270   :  { %2033 = vmatmul.mubr.bf16.gmra.mrb[16].mxu0 %v1613_v1  ;;  %3098 = vmatpush3.bf16.msra.mxu1 %v3348_v45  ;;  %v3357_v1 = vld [vmem:[%s4702_s9 + $0xc] ss:$16 sps:$4 sm:$0xff]   ;;  %v3418_v45 = vld [vmem:[%s4702_s9 + $0x160] ss:$16 sps:$4 sm:$0xff]  }
 0x271   :  { %3099 = vmatprep.subr.bf16.mxu1 %v3349_v54 }
 0x272   :  { %2538 = vmatpush1.bf16.msra.mxu0 %v3364_v53  ;;  %v3442_v53 = vld [vmem:[%s4702_s9 + $0x1e0] ss:$16 sps:$4 sm:$0xff]  }
 0x273   :  { %2539 = vmatprep.subr.bf16.mxu0 %v3372_v55 }
 0x274   :  { %3100 = vmatpush3.bf16.msra.mxu1 %v3349_v54  ;;  %v3426_v54 = vld [vmem:[%s4702_s9 + $0x184] ss:$16 sps:$4 sm:$0xff]  }
 0x275   :  { %3101 = vmatprep.subr.bf16.mxu1 %v3350_v0 }
 0x276   :  { %2540 = vmatpush1.bf16.msra.mxu0 %v3370_v36 }
 0x277   :  { %2541 = vmatprep.subr.bf16.mxu0 %v3378_v49 }
 0x278   :  { %3102 = vmatpush3.bf16.msra.mxu1 %v3350_v0  ;;  %v3421_v0 = vld [vmem:[%s4702_s9 + $0x168] ss:$16 sps:$4 sm:$0xff]  }
 0x279   :  { %3103 = vmatprep.subr.bf16.mxu1 %v3351_v16 }
 0x27a   :  { %2542 = vmatpush1.bf16.msra.mxu0 %v3376_v58 }
 0x27b   :  { %2543 = vmatprep.subr.bf16.mxu0 %v3384_v30 }
 0x27c   :  { %3104 = vmatpush3.bf16.msra.mxu1 %v3351_v16  ;;  %v3429_v16 = vld [vmem:[%s4702_s9 + $0x18c] ss:$16 sps:$4 sm:$0xff]  }
 0x27d   :  { %2586 = vmatprep.subr.bf16.mxu1 %v3357_v1  ;;  %v3433_v1 = vld [vmem:[%s4702_s9 + $0x1a8] ss:$16 sps:$4 sm:$0xff]  }
 0x27e   :  { %2544 = vmatpush1.bf16.msra.mxu0 %v3382_v59 }
 0x27f   :  { %3106 = vmatmul.mubr.msk.bf16.vlgmr.msra.gmra.mrb[32].mxu1 %vm2870_vm4, %v2871_v24  ;;  %v3373_v24 = vld [vmem:[%s4702_s9 + $0x68] ss:$16 sps:$4 sm:$0xff]   ;;  %2545 = vmatprep.subr.bf16.mxu0 %v3390_v31 }
 0x280   :  { %2587 = vmatpush1.bf16.msra.mxu1 %v3355_v19  ;;  %v3430_v19 = vld [vmem:[%s4702_s9 + $0x1a0] ss:$16 sps:$4 sm:$0xff]  }
 0x281   :  { %2588 = vmatprep.subr.bf16.mxu1 %v3363_v13  ;;  %v3438_v13 = vld [vmem:[%s4702_s9 + $0x1c4] ss:$16 sps:$4 sm:$0xff]  }
 0x282   :  { %2546 = vmatpush1.bf16.msra.mxu0 %v3388_v21 }
 0x283   :  { %2547 = vmatprep.subr.bf16.mxu0 %v3396_v50 }
 0x284   :  { %2589 = vmatpush1.bf16.msra.mxu1 %v3361_v12  ;;  %v3441_v12 = vld [vmem:[%s4702_s9 + $0x1cc] ss:$16 sps:$4 sm:$0xff]  }
 0x285   :  { %2590 = vmatprep.subr.bf16.mxu1 %v3369_v27  ;;  %v3447_v27 = vld [vmem:[%s4702_s9 + $0x1ec] ss:$16 sps:$4 sm:$0xff]  }
 0x286   :  { %2548 = vmatpush1.bf16.msra.mxu0 %v3394_v46 }
 0x287   :  { %2549 = vmatprep.subr.bf16.mxu0 %v3402_v10 }
 0x288   :  { %2591 = vmatpush1.bf16.msra.mxu1 %v3367_v2  ;;  %v3445_v2 = vld [vmem:[%s4702_s9 + $0x1e8] ss:$16 sps:$4 sm:$0xff]  }
 0x289   :  { %2592 = vmatprep.subr.bf16.mxu1 %v3375_v57 }
 0x28a   :  { %2550 = vmatpush1.bf16.msra.mxu0 %v3400_v14  ;;  %v4726_v14 = vmax.f32 %v3873_v7, 0.0 }
 0x28b   :  { %2551 = vmatprep.subr.bf16.mxu0 %v3408_v40 }
 0x28c   :  { %2593 = vmatpush1.bf16.msra.mxu1 %v3373_v24 }
 0x28d   :  { %2594 = vmatprep.subr.bf16.mxu1 %v3381_v38  ;;  %v2771_v38 = vld [vmem:[%s4703_s6] ss:$0 sm:$0xff] }
 0x28e   :  { %2552 = vmatpush1.bf16.msra.mxu0 %v3406_v18 }
 0x28f   :  { %2553 = vmatprep.subr.bf16.mxu0 %v3414_v32 }
 0x290   :  { %2595 = vmatpush1.bf16.msra.mxu1 %v3379_v35 }
 0x291   :  { %2596 = vmatprep.subr.bf16.mxu1 %v3387_v11 }
 0x292   :  { %2554 = vmatpush1.bf16.msra.mxu0 %v3412_v47 }
 0x293   :  { %2555 = vmatprep.subr.bf16.mxu0 %v3420_v17 }
 0x294   :  { %2597 = vmatpush1.bf16.msra.mxu1 %v3385_v62 }
 0x295   :  { %2598 = vmatprep.subr.bf16.mxu1 %v3393_v44 }
 0x296   :  { %2556 = vmatpush1.bf16.msra.mxu0 %v3418_v45  ;;  %v4727_v45 = vmax.f32 %v3897_v22, 0.0 }
 0x297   :  { %2557 = vmatprep.subr.bf16.mxu0 %v3426_v54  ;;  %v4728_v54 = vmax.f32 %v3899_v23, 0.0 }
 0x298   :  { %2599 = vmatpush1.bf16.msra.mxu1 %v3391_v34 }
 0x299   :  { %2600 = vmatprep.subr.bf16.mxu1 %v3399_v29 }
 0x29a   :  { %2558 = vmatpush1.bf16.msra.mxu0 %v3424_v41 }
 0x29b   :  { %2559 = vmatprep.subr.bf16.mxu0 %v3432_v39 }
 0x29c   :  { %2601 = vmatpush1.bf16.msra.mxu1 %v3397_v26  ;;  %v4725_v26 = vmax.f32 %v3871_v6, 0.0 }
 0x29d   :  { %2602 = vmatprep.subr.bf16.mxu1 %v3405_v48 }
 0x29e   :  { %2560 = vmatpush1.bf16.msra.mxu0 %v3430_v19 }
 0x29f   :  { %2561 = vmatprep.subr.bf16.mxu0 %v3438_v13 }
 0x2a0   :  { %2603 = vmatpush1.bf16.msra.mxu1 %v3403_v56 }
 0x2a1   :  { %2604 = vmatprep.subr.bf16.mxu1 %v3411_v33 }
 0x2a2   :  { %2562 = vmatpush1.bf16.msra.mxu0 %v3436_v52 }
 0x2a3   :  { %2563 = vmatprep.subr.bf16.mxu0 %v3444_v42 }
 0x2a4   :  { %2605 = vmatpush1.bf16.msra.mxu1 %v3409_v15 }
 0x2a5   :  { %2606 = vmatprep.subr.bf16.mxu1 %v3417_v43 }
 0x2a6   :  { %2564 = vmatpush1.bf16.msra.mxu0 %v3442_v53 }
 0x2a8   :  { %2607 = vmatpush1.bf16.msra.mxu1 %v3415_v28 }
 0x2a9   :  { %2608 = vmatprep.subr.bf16.mxu1 %v3423_v51 }
 0x2ac   :  { %2609 = vmatpush1.bf16.msra.mxu1 %v3421_v0 }
 0x2ad   :  { %2610 = vmatprep.subr.bf16.mxu1 %v3429_v16 }
 0x2b0   :  { %2611 = vmatpush1.bf16.msra.mxu1 %v3427_v5 }
 0x2b1   :  { %2612 = vmatprep.subr.bf16.mxu1 %v3435_v8 }
 0x2b4   :  { %2613 = vmatpush1.bf16.msra.mxu1 %v3433_v1  ;;  %v2808_v1 = vld [vmem:[%s4704_s8] ss:$0 sm:$0xff] }
 0x2b5   :  { %2614 = vmatprep.subr.bf16.mxu1 %v3441_v12 }
 0x2b8   :  { %2615 = vmatpush1.bf16.msra.mxu1 %v3439_v37 }
 0x2b9   :  { %2616 = vmatprep.subr.bf16.mxu1 %v3447_v27 }
 0x2bc   :  { %2617 = vmatpush1.bf16.msra.mxu1 %v3445_v2 }
 0x312   :  { %v2981_v55 = vpop.f32.mrb[16].mxu1 }
 0x313   :  { %v2982_v36 = vpop.f32.mrb[17].mxu1 }
 0x314   :  { %v2983_v24 = vadd.f32 %v2982_v36, %v2981_v55  ;;  %v2984_v57 = vpop.f32.mrb[18].mxu1 }
 0x315   :  { %v2985_v49 = vpop.f32.mrb[19].mxu1 }
 0x316   :  { %v2986_v58 = vadd.f32 %v2985_v49, %v2984_v57  ;;  %v1539_v59 = vadd.f32 %v2983_v24, %v2771_v38 }
 0x318   :  { %v1542_v21 = vadd.f32 %v2986_v58, %v2771_v38 }
 0x31a   :  { %v3087_v35 = vpop.f32.mrb[8].mxu0 }
 0x31b   :  { %v1587_v30 = vpop.f32.mrb[9].mxu0 }
 0x31c   :  { %v1588_v62 = vadd.f32 %v1587_v30, %v1539_v59  ;;  %v3088_v11 = vpop.f32.mrb[10].mxu0 }
 0x31d   :  { %v1590_v31 = vpop.f32.mrb[11].mxu0 }
 0x31e   :  { %v1602_v34 = vmax.f32 %v1588_v62, 0.0  ;;  %v1591_v44 = vadd.f32 %v1590_v31, %v1542_v21 }
 0x320   :  { %v1603_v46 = vmax.f32 %v1591_v44, 0.0  ;;  %v2115_v29 = vadd.f32 %v1602_v34, %v4725_v26  ;;  %v2099_v26 = vpop.permute.xlu0 %2098 }
 0x322   :  { %v2987_v50 = vpop.f32.mrb[20].mxu1  ;;  %v2117_v10 = vadd.f32 %v1603_v46, %v4726_v14  ;;  %v2103_v46 = vpop.permute.xlu1 %2102 }
 0x323   :  { %v2988_v48 = vpop.f32.mrb[21].mxu1 }
 0x324   :  { %v2989_v56 = vadd.f32 %v2988_v48, %v2987_v50  ;;  %v2990_v18 = vpop.f32.mrb[22].mxu1  ;;  %v4616_v40 = vpack.c.bf16 %v2117_v10, %v2115_v29 }
 0x325   :  { %v2991_v33 = vpop.f32.mrb[23].mxu1 }
 0x326   :  { %v1547_v15 = vadd.f32 %v2989_v56, %v2771_v38  ;;  %v2992_v32 = vadd.f32 %v2991_v33, %v2990_v18 }
 0x328   :  { %v1596_v43 = vadd.f32 %v3087_v35, %v1547_v15  ;;  %v1550_v47 = vadd.f32 %v2992_v32, %v2771_v38 }
 0x32a   :  { %v1604_v17 = vmax.f32 %v1596_v43, 0.0  ;;  %v1599_v28 = vadd.f32 %v3088_v11, %v1550_v47 }
 0x32c   :  { %v1605_v51 = vmax.f32 %v1599_v28, 0.0  ;;  %v2119_v6 = vadd.f32 %v1604_v17, %v4727_v45  ;;  %v2105_v17 = vpop.permute.xlu1 %2104  ;;  %v2101_v45 = vpop.permute.xlu0 %2100 }
 0x32e   :  { %v2121_v7 = vadd.f32 %v1605_v51, %v4728_v54 }
 0x330   :  { %v4622_v0 = vpack.c.bf16 %v2121_v7, %v2119_v6  ;;  %v4729_v7 = vmax.f32 %v3895_v20, 0.0 }
 0x332   :  { %v3019_v16 = vpop.f32.mrb[24].mxu1 }
 0x333   :  { %v3020_v41 = vpop.f32.mrb[25].mxu1 }
 0x334   :  { %v3021_v5 = vadd.f32 %v3020_v41, %v3019_v16  ;;  %v3022_v39 = vpop.f32.mrb[26].mxu1  ;;  %v4730_v41 = vmax.f32 %v3901_v25, 0.0 }
 0x335   :  { %v3023_v8 = vpop.f32.mrb[27].mxu1 }
 0x336   :  { %v3024_v19 = vadd.f32 %v3023_v8, %v3022_v39  ;;  %v1978_v23 = vadd.f32 %v3021_v5, %v2808_v1  ;;  %v4731_v39 = vmax.f32 %v3869_v4, 0.0  ;;  %v2191_v4 = vld [vmem:[%s4705_s10] sm:$0xf] }
 0x337   :  { %v2196_v20 = vrot.slane %v2191_v4, %v3865_v63  ;;  %v2204_v25 = vrot.slane %v2191_v4, %v653_v3 }
 0x338   :  { %v1981_v24 = vadd.f32 %v3024_v19, %v2808_v1  ;;  %v4732_v19 = vmax.f32 %v3875_v9, 0.0  ;;  %v2207_v9 = vsub.s32 3, %v3856_v60 }
 0x33a   :  { %v3025_v52 = vpop.f32.mrb[28].mxu1 }
 0x33b   :  { %v3047_v13 = vpop.f32.mrb[12].mxu0  ;;  %v3026_v37 = vpop.f32.mrb[29].mxu1 }
 0x33c   :  { %v3027_v22 = vadd.f32 %v3026_v37, %v3025_v52  ;;  %v3048_v12 = vpop.f32.mrb[13].mxu0  ;;  %v3028_v42 = vpop.f32.mrb[30].mxu1  ;;  %v2200_v37 = vrot.slane %v2191_v4, %v3859_v61 }
 0x33d   :  { %v3049_v27 = vadd.f32 %v3048_v12, %v3047_v13  ;;  %v3050_v53 = vpop.f32.mrb[14].mxu0  ;;  %v3029_v2 = vpop.f32.mrb[31].mxu1 }
 0x33e   :  { %v3030_v55 = vadd.f32 %v3029_v2, %v3028_v42  ;;  %v3051_v36 = vpop.f32.mrb[15].mxu0  ;;  %v1986_v59 = vadd.f32 %v3027_v22, %v2808_v1 }
 0x33f   :  { %v3052_v57 = vadd.f32 %v3051_v36, %v3050_v53  ;;  %v2027_v49 = vadd.f32 %v3049_v27, %v1978_v23 }
 0x340   :  { %v1989_v21 = vadd.f32 %v3030_v55, %v2808_v1 }
 0x341   :  { %v2030_v58 = vadd.f32 %v3052_v57, %v1981_v24 }
 0x343   :  { %v3053_v38 = vpop.f32.mrb[16].mxu0 }
 0x344   :  { %v3054_v35 = vpop.f32.mrb[17].mxu0 }
 0x345   :  { %v3055_v30 = vadd.f32 %v3054_v35, %v3053_v38  ;;  %v3056_v62 = vpop.f32.mrb[18].mxu0 }
 0x346   :  { %v3057_v11 = vpop.f32.mrb[19].mxu0 }
 0x347   :  { %v3058_v31 = vadd.f32 %v3057_v11, %v3056_v62  ;;  %v2035_v34 = vadd.f32 %v3055_v30, %v1986_v59 }
 0x349   :  { %v2038_v44 = vadd.f32 %v3058_v31, %v1989_v21 }
 0x352   :  { %v3107_v50 = vpop.f32.mrb[32].mxu1 }
 0x353   :  { %v2084_v29 = vadd.f32 %v3107_v50, %v2035_v34  ;;  %v2075_v14 = vpop.f32.mrb[33].mxu1 }
 0x354   :  { %v2076_v10 = vadd.f32 %v2075_v14, %v2027_v49  ;;  %v3108_v48 = vpop.f32.mrb[34].mxu1 }
 0x355   :  { %v2092_v56 = vmax.f32 %v2084_v29, 0.0  ;;  %v2087_v18 = vadd.f32 %v3108_v48, %v2038_v44  ;;  %v2078_v33 = vpop.f32.mrb[35].mxu1 }
 0x356   :  { %v2090_v15 = vmax.f32 %v2076_v10, 0.0  ;;  %v2079_v32 = vadd.f32 %v2078_v33, %v2030_v58 }
 0x357   :  { %v2113_v43 = vsel %vm2110_vm5, %v2092_v56, %v2103_v46  ;;  %v2093_v47 = vmax.f32 %v2087_v18, 0.0 }
 0x358   :  { %v2111_v28 = vsel %vm2110_vm5, %v2090_v15, %v2099_v26  ;;  %v2091_v51 = vmax.f32 %v2079_v32, 0.0  ;;  %v2120_v16 = vadd.f32 %v2113_v43, %v4729_v7 }
 0x359   :  { %v2114_v6 = vsel %vm2110_vm5, %v2093_v47, %v2105_v17  ;;  %v2116_v8 = vadd.f32 %v2111_v28, %v4731_v39 }
 0x35a   :  { %v2112_v54 = vsel %vm2110_vm5, %v2091_v51, %v2101_v45  ;;  %v2122_v5 = vadd.f32 %v2114_v6, %v4730_v41 }
 0x35b   :  { %v2118_v1 = vadd.f32 %v2112_v54, %v4732_v19 }
 0x35c   :  { %v2126_v52 = vpack.c.bf16 %v2122_v5, %v2120_v16 }
 0x35d   :  { %v2124_v13 = vpack.c.bf16 %v2118_v1, %v2116_v8 }
 0x35f   :  { %2565 = vmatprep.mubr.bf16.mxu0 %v2124_v13  ;;  %2618 = vmatprep.mubr.bf16.mxu1 %v2124_v13 }
 0x360   :  { %2566 = vmatmul.mubr.bf16.vlgmr.msra.gmra.mrb[20].mxu0 %v4616_v40  ;;  %2619 = vmatmul.mubr.bf16.vlgmr.msra.gmra.mrb[36].mxu1 %v4616_v40  ;;  %v2208_v40 = vrot.slane %v2191_v4, %v2207_v9 }
 0x361   :  { %2575 = vmatprep.mubr.bf16.mxu0 %v2126_v52  ;;  %2628 = vmatprep.mubr.bf16.mxu1 %v2126_v52 }
 0x368   :  { %2576 = vmatmul.mubr.bf16.gmra.mrb[24].mxu0 %v4622_v0  ;;  %2629 = vmatmul.mubr.bf16.gmra.mrb[40].mxu1 %v4622_v0 }
 0x433   :  { %v2567_v22 = vpop.f32.mrb[20].mxu0  ;;  %v2620_v12 = vpop.f32.mrb[36].mxu1 }
 0x434   :  { %v2568_v42 = vadd.f32 %v2567_v22, %v2196_v20  ;;  %v2621_v23 = vadd.f32 %v2620_v12, %v2204_v25  ;;  %v2569_v27 = vpop.f32.mrb[21].mxu0  ;;  %v2622_v0 = vpop.f32.mrb[37].mxu1 }
 0x435   :  { %v2570_v53 = vadd.f32 %v2569_v27, %v2200_v37  ;;  %v2623_v2 = vadd.f32 %v2622_v0, %v2208_v40  ;;  %v2571_v55 = vpop.f32.mrb[22].mxu0  ;;  %v2624_v36 = vpop.f32.mrb[38].mxu1 }
 0x436   :  { %2639 = vst [vmem:[%s4706_s11] sm:$0xff] %v2568_v42  ;;  %2641 = vst [vmem:[%s4706_s11 + $0x10] sm:$0xff] %v2621_v23  ;;  %v2572_v60 = vadd.f32 %v2571_v55, %v2196_v20  ;;  %v2625_v61 = vadd.f32 %v2624_v36, %v2204_v25  ;;  %v2573_v63 = vpop.f32.mrb[23].mxu0  ;;  %v2626_v3 = vpop.f32.mrb[39].mxu1 }
 0x437   :  { %2640 = vst [vmem:[%s4706_s11 + $0x8] sm:$0xff] %v2570_v53  ;;  %2642 = vst [vmem:[%s4706_s11 + $0x18] sm:$0xff] %v2623_v2  ;;  %v2574_v24 = vadd.f32 %v2573_v63, %v2200_v37  ;;  %v2627_v57 = vadd.f32 %v2626_v3, %v2208_v40 }
 0x438   :  { %2643 = vst [vmem:[%s4706_s11 + $0x20] sm:$0xff] %v2572_v60  ;;  %2645 = vst [vmem:[%s4706_s11 + $0x30] sm:$0xff] %v2625_v61 }
 0x439   :  { %2644 = vst [vmem:[%s4706_s11 + $0x28] sm:$0xff] %v2574_v24  ;;  %2646 = vst [vmem:[%s4706_s11 + $0x38] sm:$0xff] %v2627_v57 }
 0x43b   :  { %v2577_v49 = vpop.f32.mrb[24].mxu0  ;;  %v2630_v58 = vpop.f32.mrb[40].mxu1 }
 0x43c   :  { %v2578_v38 = vadd.f32 %v2577_v49, %v2196_v20  ;;  %v2631_v35 = vadd.f32 %v2630_v58, %v2204_v25  ;;  %v2579_v59 = vpop.f32.mrb[25].mxu0  ;;  %v2632_v30 = vpop.f32.mrb[41].mxu1 }
 0x43d   :  { %v2580_v62 = vadd.f32 %v2579_v59, %v2200_v37  ;;  %v2633_v11 = vadd.f32 %v2632_v30, %v2208_v40  ;;  %v2581_v21 = vpop.f32.mrb[26].mxu0  ;;  %v2634_v31 = vpop.f32.mrb[42].mxu1 }
 0x43e   :  { %2647 = vst [vmem:[%s4706_s11 + $0x40] sm:$0xff] %v2578_v38  ;;  %2649 = vst [vmem:[%s4706_s11 + $0x50] sm:$0xff] %v2631_v35  ;;  %v2582_v34 = vadd.f32 %v2581_v21, %v2196_v20  ;;  %v2635_v44 = vadd.f32 %v2634_v31, %v2204_v25  ;;  %v2583_v46 = vpop.f32.mrb[27].mxu0  ;;  %v2636_v50 = vpop.f32.mrb[43].mxu1 }
 0x43f   :  { %2648 = vst [vmem:[%s4706_s11 + $0x48] sm:$0xff] %v2580_v62  ;;  %2650 = vst [vmem:[%s4706_s11 + $0x58] sm:$0xff] %v2633_v11  ;;  %v2584_v26 = vadd.f32 %v2583_v46, %v2200_v37  ;;  %v2637_v29 = vadd.f32 %v2636_v50, %v2208_v40 }
 0x440   :  { %2651 = vst [vmem:[%s4706_s11 + $0x60] sm:$0xff] %v2582_v34  ;;  %2653 = vst [vmem:[%s4706_s11 + $0x70] sm:$0xff] %v2635_v44 }
 0x441   :  { %2652 = vst [vmem:[%s4706_s11 + $0x68] sm:$0xff] %v2584_v26  ;;  %2654 = vst [vmem:[%s4706_s11 + $0x78] sm:$0xff] %v2637_v29 }

</bundles_post_ra>
